<compile_context>
chip_gen: v6e
topology: v6e:2x2x1
jax: 0.10.0
libtpu: 0.0.40
codegen_flags: <defaults>
</compile_context>

<pallas_src>
import functools

import jax
import jax.numpy as jnp
from jax.experimental import pallas as pl
from jax.experimental.pallas import tpu as pltpu


def _bmf_kernel(Ws, E, NB, mxu_min_cin,
                x_ref, rmask_ref, cmask_ref,
                w_proj_ref, b_proj_ref,
                w_vert_ref, b_vert_ref,
                w_horiz_ref, b_horiz_ref,
                w_local_ref, b_local_ref,
                w_gv_ref, b_gv_ref,
                w_gh_ref, b_gh_ref,
                w_fuse_v_ref, w_fuse_h_ref, w_fuse_l_ref, b_fuse_ref,
                y_ref, stats_ref):
    P = x_ref.shape[-1]                            # flattened spatial, lane axis

    # ---- 1x1 convs: MXU bf16 dot for wide channel counts, VPU MAC otherwise.
    # TODO(synk): lower mxu_min_cin to ~16 on v5e (4x128^2 MXU); keep f32 on
    # the VPU path there (v5e VPU/EUP have no bf16).
    def mac_into(acc, w, act):
        cin = w.shape[1]
        if cin >= mxu_min_cin:
            return acc + jnp.dot(w.astype(jnp.bfloat16),
                                 act.astype(jnp.bfloat16),
                                 preferred_element_type=jnp.float32)
        for c in range(cin):                       # VPU broadcast-MAC
            acc = acc + w[:, c:c + 1] * act[c:c + 1, :]
        return acc

    # Pad the sublane dim up to a multiple of 8 so the lane rotate stays on the
    # aligned native-tile path (padding rows are sliced off again after the
    # roll; lane rotation never mixes rows, so any padding content is fine).
    def padded(t):
        pad = (-t.shape[0]) % 8
        if pad == 0:
            return t
        return jnp.concatenate(
            [t, jnp.zeros((pad, t.shape[1]), t.dtype)], axis=0)

    # tap(tp, rows, s, m)[d, p] == src[d, p + s] with zero padding: the roll
    # wrap-around (row / image-border crossings) is zeroed by the mask `m`.
    def tap(tp, rows, s, m):
        r = pltpu.roll(tp, shift=(-s) % P, axis=1)       # XLU lane rotate
        if tp.shape[0] != rows:
            r = r[:rows, :]
        return r if m is None else r * m

    for b in range(NB):
        x = x_ref[b]                               # (D, P), lane-dense
        D = x.shape[0]

        # ---- proj_in (1x1) --------------------------------------------------
        proj = mac_into(b_proj_ref[...], w_proj_ref[...], x)   # (Hd, P)
        Hd = proj.shape[0]
        proj_p = padded(proj)

        # ---- vert (5,1) dw: whole-row lane rolls + row masks ------------------
        # ---- horiz (1,5) dw: unit lane rolls + column masks -------------------
        v = proj * w_vert_ref[2] + b_vert_ref[...]             # center taps
        h = proj * w_horiz_ref[2] + b_horiz_ref[...]
        for k in (0, 1, 3, 4):
            d = k - 2
            v = v + tap(proj_p, Hd, d * Ws, rmask_ref[k]) * w_vert_ref[k]
            h = h + tap(proj_p, Hd, d,      cmask_ref[k]) * w_horiz_ref[k]

        # ---- cross gates (1x1 + sigmoid), matching the reference order --------
        gv = jax.nn.sigmoid(mac_into(b_gv_ref[...], w_gv_ref[...], h))  # gate_v(h)
        gh = jax.nn.sigmoid(mac_into(b_gh_ref[...], w_gh_ref[...], v))  # gate_h(v)
        v = v * gv
        h = h * gh

        # ---- local 3x3 grouped conv (groups=D, multiplier E) ------------------
        # Channel expansion folded into the per-slot weights: slot e produces
        # output channels d*E+e from the un-expanded (D, P) input, so every tap
        # rolls only (D, P) instead of (Hd, P) and no x-expansion is built.
        x_p = padded(x)
        loc = [b_local_ref[e] for e in range(E)]   # (D, 1) biases, broadcast
        taps3 = [(dy, dx) for dy in (-1, 0, 1) for dx in (-1, 0, 1)]
        for t, (dy, dx) in enumerate(taps3):
            if dy == 0 and dx == 0:
                xs = x
            else:
                m = rmask_ref[dy + 2] if dy != 0 else None
                if dx != 0:
                    m = cmask_ref[dx + 2] if m is None else m * cmask_ref[dx + 2]
                xs = tap(x_p, D, dy * Ws + dx, m)
            for e in range(E):
                loc[e] = loc[e] + w_local_ref[e * 9 + t] * xs

        # ---- fuse (1x1 over [v, h, local]) + residual --------------------------
        fused = b_fuse_ref[...] + x                # residual folded into init
        fused = mac_into(fused, w_fuse_v_ref[...], v)
        fused = mac_into(fused, w_fuse_h_ref[...], h)
        for e in range(E):
            fused = mac_into(fused, w_fuse_l_ref[e], loc[e])    # (D, P)

        y_ref[b] = fused
        # Packed BatchNorm statistics: one (D, 2) [sum, sum_sq] store per element.
        stats_ref[b] = jnp.concatenate(
            [jnp.sum(fused, axis=1, keepdims=True),
             jnp.sum(fused * fused, axis=1, keepdims=True)], axis=1)


def init_params(key, dim, expansion=2):
    Hd = dim * expansion
    ks = jax.random.split(key, 16)
    s = 0.1
    return {
        "expansion": expansion,
        # 1x1 conv weights kept in the PyTorch (out_ch, in_ch) orientation.
        "w_proj":  s * jax.random.normal(ks[0],  (Hd, dim),  jnp.float32),
        "b_proj":  s * jax.random.normal(ks[1],  (Hd, 1),    jnp.float32),
        "w_vert":  s * jax.random.normal(ks[2],  (5, Hd),    jnp.float32),
        "b_vert":  s * jax.random.normal(ks[3],  (Hd, 1),    jnp.float32),
        "w_horiz": s * jax.random.normal(ks[4],  (5, Hd),    jnp.float32),
        "b_horiz": s * jax.random.normal(ks[5],  (Hd, 1),    jnp.float32),
        "w_local": s * jax.random.normal(ks[6],  (3, 3, Hd), jnp.float32),
        "b_local": s * jax.random.normal(ks[7],  (Hd, 1),    jnp.float32),
        "w_gv":    s * jax.random.normal(ks[8],  (Hd, Hd),   jnp.float32),
        "b_gv":    s * jax.random.normal(ks[9],  (Hd, 1),    jnp.float32),
        "w_gh":    s * jax.random.normal(ks[10], (Hd, Hd),   jnp.float32),
        "b_gh":    s * jax.random.normal(ks[11], (Hd, 1),    jnp.float32),
        # fuse weight (dim, 3*Hd) split into the [v, h, local] column blocks.
        "w_fuse_v": s * jax.random.normal(ks[12], (dim, Hd), jnp.float32),
        "w_fuse_h": s * jax.random.normal(ks[13], (dim, Hd), jnp.float32),
        "w_fuse_l": s * jax.random.normal(ks[14], (dim, Hd), jnp.float32),
        "b_fuse":  s * jax.random.normal(ks[15], (dim, 1),   jnp.float32),
        "gamma":   jnp.ones((dim,), jnp.float32),   # BatchNorm2d default weight
        "beta":    jnp.zeros((dim,), jnp.float32),  # BatchNorm2d default bias
    }


def bmf_block_forward(x_nchw, params, *, batch_block=1, mxu_min_cin=32):
    N, D, Hs, Ws = x_nchw.shape
    E = params["expansion"]
    Hd = D * E
    P = Hs * Ws
    assert N % batch_block == 0
    NB = batch_block

    # NCHW with spatial flattened into lanes (free reshape, no transpose).
    x = x_nchw.reshape(N, D, P).astype(jnp.float32)

    # Tiny (5, 1, P) validity masks for row/column shifts of the flattened
    # spatial axis; they replace the old lane-expanded (5|9, Hd, P) weights.
    col = jnp.arange(P, dtype=jnp.int32) % Ws
    row = jnp.arange(P, dtype=jnp.int32) // Ws
    cmask = jnp.stack([((col + k - 2 >= 0) & (col + k - 2 < Ws)) for k in range(5)])
    rmask = jnp.stack([((row + k - 2 >= 0) & (row + k - 2 < Hs)) for k in range(5)])
    cmask = cmask.astype(jnp.float32)[:, None, :]          # (5, 1, P)
    rmask = rmask.astype(jnp.float32)[:, None, :]          # (5, 1, P)

    # Depthwise taps in native (tap, Hd, 1) orientation.
    w_vert = params["w_vert"][:, :, None]                  # (5, Hd, 1)
    w_horiz = params["w_horiz"][:, :, None]                # (5, Hd, 1)

    # Grouped-3x3 weights rearranged per expansion slot e (out ch o = d*E + e),
    # so the kernel can use the un-expanded (D, P) input directly.
    w_local_e = jnp.transpose(params["w_local"].reshape(9, D, E),
                              (2, 0, 1)).reshape(E * 9, D)[:, :, None]   # (E*9, D, 1)
    b_local_e = params["b_local"].reshape(D, E).T[:, :, None]            # (E, D, 1)
    w_fuse_l_e = jnp.transpose(params["w_fuse_l"].reshape(D, D, E),
                               (2, 0, 1))                                # (E, D, D)

    def _full(shape):
        return pl.BlockSpec(shape, lambda n, _r=(0,) * len(shape): _r)

    spec_x = pl.BlockSpec((NB, D, P), lambda n: (n, 0, 0))
    spec_y = pl.BlockSpec((NB, D, P), lambda n: (n, 0, 0))
    spec_s = pl.BlockSpec((NB, D, 2), lambda n: (n, 0, 0))

    kernel = functools.partial(_bmf_kernel, Ws, E, NB, mxu_min_cin)

    # TODO(synk): for large Hs*Ws add a spatial row-tile grid axis (2-row halo);
    # on v7x keep >=2 grid steps per TensorCore (split batch / add a tile axis).
    y, stats = pl.pallas_call(
        kernel,
        out_shape=(jax.ShapeDtypeStruct((N, D, P), jnp.float32),
                   jax.ShapeDtypeStruct((N, D, 2), jnp.float32)),
        grid=(N // NB,),
        in_specs=[spec_x,
                  _full((5, 1, P)), _full((5, 1, P)),
                  _full((Hd, D)), _full((Hd, 1)),
                  _full((5, Hd, 1)), _full((Hd, 1)),
                  _full((5, Hd, 1)), _full((Hd, 1)),
                  _full((E * 9, D, 1)), _full((E, D, 1)),
                  _full((Hd, Hd)), _full((Hd, 1)),
                  _full((Hd, Hd)), _full((Hd, 1)),
                  _full((D, Hd)), _full((D, Hd)),
                  _full((E, D, D)), _full((D, 1))],
        out_specs=[spec_y, spec_s],
        compiler_params=pltpu.CompilerParams(
            dimension_semantics=("parallel",),
            # Explicit scoped-VMEM budget: > v5e's 16 MiB default, comfortably
            # below v7x's 64 MiB physical VMEM.  Weights are O(Hd^2) now, so no
            # single-buffering (pl.Buffered(1)) of the constant specs is needed.
            vmem_limit_bytes=48 * 1024 * 1024),
    )(x, rmask, cmask,
      params["w_proj"], params["b_proj"],
      w_vert, params["b_vert"],
      w_horiz, params["b_horiz"],
      w_local_e, b_local_e,
      params["w_gv"], params["b_gv"],
      params["w_gh"], params["b_gh"],
      params["w_fuse_v"], params["w_fuse_h"], w_fuse_l_e,
      params["b_fuse"])

    # BatchNorm2d, training mode (batch statistics, biased variance), eps=1e-5.
    # Stats come from the in-kernel packed partial sums; affine + final reshape
    # are trivially mem-bound elementwise ops left to XLA to fuse.
    # TODO(synk): E[x^2]-mean^2 in f32 can lose precision for huge activations;
    # switch to a two-pass / Welford combine here if tighter matching is needed.
    eps = 1e-5
    cnt = jnp.float32(N * P)
    mean = jnp.sum(stats[:, :, 0], axis=0) / cnt
    var = jnp.maximum(jnp.sum(stats[:, :, 1], axis=0) / cnt - mean * mean, 0.0)
    inv = params["gamma"] / jnp.sqrt(var + eps)
    scale = inv.reshape(1, D, 1)
    shift = (params["beta"] - mean * inv).reshape(1, D, 1)
    out = y * scale + shift
    return out.reshape(N, D, Hs, Ws)               # already NCHW: free reshape


if __name__ == "__main__":
    key = jax.random.PRNGKey(0)
    kx, kp = jax.random.split(key)

    N, D, Hs, Ws = 2, 4, 16, 16                    # batch, dim, spatial
    x = jax.random.normal(kx, (N, D, Hs, Ws), jnp.float32)
    params = init_params(kp, D, expansion=2)

    out = bmf_block_forward(x, params)
    jax.block_until_ready(out)
    assert out.shape == (N, D, Hs, Ws)
    assert bool(jnp.all(jnp.isfinite(out)))
    print("KERNEL_OK")
</pallas_src>

<mosaic_0001>
module attributes {stable_mosaic.version = 11 : i64} {
  func.func @_bmf_kernel(%arg0: i32, %arg1: memref<1x4x256xf32, #tpu.memory_space<vmem>>, %arg2: memref<5x1x256xf32, #tpu.memory_space<vmem>>, %arg3: memref<5x1x256xf32, #tpu.memory_space<vmem>>, %arg4: memref<8x4xf32, #tpu.memory_space<vmem>>, %arg5: memref<8x1xf32, #tpu.memory_space<vmem>>, %arg6: memref<5x8x1xf32, #tpu.memory_space<vmem>>, %arg7: memref<8x1xf32, #tpu.memory_space<vmem>>, %arg8: memref<5x8x1xf32, #tpu.memory_space<vmem>>, %arg9: memref<8x1xf32, #tpu.memory_space<vmem>>, %arg10: memref<18x4x1xf32, #tpu.memory_space<vmem>>, %arg11: memref<2x4x1xf32, #tpu.memory_space<vmem>>, %arg12: memref<8x8xf32, #tpu.memory_space<vmem>>, %arg13: memref<8x1xf32, #tpu.memory_space<vmem>>, %arg14: memref<8x8xf32, #tpu.memory_space<vmem>>, %arg15: memref<8x1xf32, #tpu.memory_space<vmem>>, %arg16: memref<4x8xf32, #tpu.memory_space<vmem>>, %arg17: memref<4x8xf32, #tpu.memory_space<vmem>>, %arg18: memref<2x4x4xf32, #tpu.memory_space<vmem>>, %arg19: memref<4x1xf32, #tpu.memory_space<vmem>>, %arg20: memref<1x4x256xf32, #tpu.memory_space<vmem>>, %arg21: memref<1x4x2xf32, #tpu.memory_space<vmem>>) attributes {dimension_semantics = [#tpu.dimension_semantics<parallel>], iteration_bounds = array<i64: 2>, scalar_prefetch = 0 : i64, scratch_operands = 0 : i64, tpu.core_type = #tpu.core_type<tc>, window_params = [{transform_indices = @transform_0, window_bounds = array<i64: 1, 4, 256>}, {pipeline_mode = #tpu.pipeline_mode<synchronous>, transform_indices = @transform_1, window_bounds = array<i64: 5, 1, 256>}, {pipeline_mode = #tpu.pipeline_mode<synchronous>, transform_indices = @transform_2, window_bounds = array<i64: 5, 1, 256>}, {pipeline_mode = #tpu.pipeline_mode<synchronous>, transform_indices = @transform_3, window_bounds = array<i64: 8, 4>}, {pipeline_mode = #tpu.pipeline_mode<synchronous>, transform_indices = @transform_4, window_bounds = array<i64: 8, 1>}, {pipeline_mode = #tpu.pipeline_mode<synchronous>, transform_indices = @transform_5, window_bounds = array<i64: 5, 8, 1>}, {pipeline_mode = #tpu.pipeline_mode<synchronous>, transform_indices = @transform_6, window_bounds = array<i64: 8, 1>}, {pipeline_mode = #tpu.pipeline_mode<synchronous>, transform_indices = @transform_7, window_bounds = array<i64: 5, 8, 1>}, {pipeline_mode = #tpu.pipeline_mode<synchronous>, transform_indices = @transform_8, window_bounds = array<i64: 8, 1>}, {pipeline_mode = #tpu.pipeline_mode<synchronous>, transform_indices = @transform_9, window_bounds = array<i64: 18, 4, 1>}, {pipeline_mode = #tpu.pipeline_mode<synchronous>, transform_indices = @transform_10, window_bounds = array<i64: 2, 4, 1>}, {pipeline_mode = #tpu.pipeline_mode<synchronous>, transform_indices = @transform_11, window_bounds = array<i64: 8, 8>}, {pipeline_mode = #tpu.pipeline_mode<synchronous>, transform_indices = @transform_12, window_bounds = array<i64: 8, 1>}, {pipeline_mode = #tpu.pipeline_mode<synchronous>, transform_indices = @transform_13, window_bounds = array<i64: 8, 8>}, {pipeline_mode = #tpu.pipeline_mode<synchronous>, transform_indices = @transform_14, window_bounds = array<i64: 8, 1>}, {pipeline_mode = #tpu.pipeline_mode<synchronous>, transform_indices = @transform_15, window_bounds = array<i64: 4, 8>}, {pipeline_mode = #tpu.pipeline_mode<synchronous>, transform_indices = @transform_16, window_bounds = array<i64: 4, 8>}, {pipeline_mode = #tpu.pipeline_mode<synchronous>, transform_indices = @transform_17, window_bounds = array<i64: 2, 4, 4>}, {pipeline_mode = #tpu.pipeline_mode<synchronous>, transform_indices = @transform_18, window_bounds = array<i64: 4, 1>}, {transform_indices = @transform_19, window_bounds = array<i64: 1, 4, 256>}, {transform_indices = @transform_20, window_bounds = array<i64: 1, 4, 2>}]} {
    %c0 = arith.constant 0 : index
    %c0_0 = arith.constant 0 : index
    %c0_1 = arith.constant 0 : index
    %0 = vector.load %arg1[%c0, %c0_0, %c0_1] : memref<1x4x256xf32, #tpu.memory_space<vmem>>, vector<1x4x256xf32>
    %1 = vector.shape_cast %0 : vector<1x4x256xf32> to vector<4x256xf32>
    %c0_2 = arith.constant 0 : index
    %c0_3 = arith.constant 0 : index
    %2 = vector.load %arg5[%c0_2, %c0_3] : memref<8x1xf32, #tpu.memory_space<vmem>>, vector<8x1xf32>
    %c0_4 = arith.constant 0 : index
    %c0_5 = arith.constant 0 : index
    %3 = vector.load %arg4[%c0_4, %c0_5] : memref<8x4xf32, #tpu.memory_space<vmem>>, vector<8x4xf32>
    %4 = vector.extract_strided_slice %3 {offsets = [0, 0], sizes = [8, 1], strides = [1, 1]} : vector<8x4xf32> to vector<8x1xf32>
    %5 = vector.extract_strided_slice %1 {offsets = [0, 0], sizes = [1, 256], strides = [1, 1]} : vector<4x256xf32> to vector<1x256xf32>
    %6 = vector.broadcast %4 : vector<8x1xf32> to vector<8x256xf32>
    %7 = vector.broadcast %5 : vector<1x256xf32> to vector<8x256xf32>
    %8 = arith.mulf %6, %7 : vector<8x256xf32>
    %9 = vector.broadcast %2 : vector<8x1xf32> to vector<8x256xf32>
    %10 = arith.addf %9, %8 : vector<8x256xf32>
    %11 = vector.extract_strided_slice %3 {offsets = [0, 1], sizes = [8, 1], strides = [1, 1]} : vector<8x4xf32> to vector<8x1xf32>
    %12 = vector.extract_strided_slice %1 {offsets = [1, 0], sizes = [1, 256], strides = [1, 1]} : vector<4x256xf32> to vector<1x256xf32>
    %13 = vector.broadcast %11 : vector<8x1xf32> to vector<8x256xf32>
    %14 = vector.broadcast %12 : vector<1x256xf32> to vector<8x256xf32>
    %15 = arith.mulf %13, %14 : vector<8x256xf32>
    %16 = arith.addf %10, %15 : vector<8x256xf32>
    %17 = vector.extract_strided_slice %3 {offsets = [0, 2], sizes = [8, 1], strides = [1, 1]} : vector<8x4xf32> to vector<8x1xf32>
    %18 = vector.extract_strided_slice %1 {offsets = [2, 0], sizes = [1, 256], strides = [1, 1]} : vector<4x256xf32> to vector<1x256xf32>
    %19 = vector.broadcast %17 : vector<8x1xf32> to vector<8x256xf32>
    %20 = vector.broadcast %18 : vector<1x256xf32> to vector<8x256xf32>
    %21 = arith.mulf %19, %20 : vector<8x256xf32>
    %22 = arith.addf %16, %21 : vector<8x256xf32>
    %23 = vector.extract_strided_slice %3 {offsets = [0, 3], sizes = [8, 1], strides = [1, 1]} : vector<8x4xf32> to vector<8x1xf32>
    %24 = vector.extract_strided_slice %1 {offsets = [3, 0], sizes = [1, 256], strides = [1, 1]} : vector<4x256xf32> to vector<1x256xf32>
    %25 = vector.broadcast %23 : vector<8x1xf32> to vector<8x256xf32>
    %26 = vector.broadcast %24 : vector<1x256xf32> to vector<8x256xf32>
    %27 = arith.mulf %25, %26 : vector<8x256xf32>
    %28 = arith.addf %22, %27 : vector<8x256xf32>
    %c2 = arith.constant 2 : index
    %c0_6 = arith.constant 0 : index
    %c0_7 = arith.constant 0 : index
    %29 = vector.load %arg6[%c2, %c0_6, %c0_7] : memref<5x8x1xf32, #tpu.memory_space<vmem>>, vector<1x8x1xf32>
    %30 = vector.shape_cast %29 : vector<1x8x1xf32> to vector<8x1xf32>
    %31 = vector.broadcast %30 : vector<8x1xf32> to vector<8x256xf32>
    %32 = arith.mulf %28, %31 : vector<8x256xf32>
    %c0_8 = arith.constant 0 : index
    %c0_9 = arith.constant 0 : index
    %33 = vector.load %arg7[%c0_8, %c0_9] : memref<8x1xf32, #tpu.memory_space<vmem>>, vector<8x1xf32>
    %34 = vector.broadcast %33 : vector<8x1xf32> to vector<8x256xf32>
    %35 = arith.addf %32, %34 : vector<8x256xf32>
    %c2_10 = arith.constant 2 : index
    %c0_11 = arith.constant 0 : index
    %c0_12 = arith.constant 0 : index
    %36 = vector.load %arg8[%c2_10, %c0_11, %c0_12] : memref<5x8x1xf32, #tpu.memory_space<vmem>>, vector<1x8x1xf32>
    %37 = vector.shape_cast %36 : vector<1x8x1xf32> to vector<8x1xf32>
    %38 = vector.broadcast %37 : vector<8x1xf32> to vector<8x256xf32>
    %39 = arith.mulf %28, %38 : vector<8x256xf32>
    %c0_13 = arith.constant 0 : index
    %c0_14 = arith.constant 0 : index
    %40 = vector.load %arg9[%c0_13, %c0_14] : memref<8x1xf32, #tpu.memory_space<vmem>>, vector<8x1xf32>
    %41 = vector.broadcast %40 : vector<8x1xf32> to vector<8x256xf32>
    %42 = arith.addf %39, %41 : vector<8x256xf32>
    %c0_15 = arith.constant 0 : index
    %c0_16 = arith.constant 0 : index
    %c0_17 = arith.constant 0 : index
    %43 = vector.load %arg2[%c0_15, %c0_16, %c0_17] : memref<5x1x256xf32, #tpu.memory_space<vmem>>, vector<1x1x256xf32>
    %44 = vector.shape_cast %43 : vector<1x1x256xf32> to vector<1x256xf32>
    %c32_i32 = arith.constant 32 : i32
    %45 = tpu.dynamic_rotate %28 by %c32_i32 dim 1 : vector<8x256xf32>, i32 -> vector<8x256xf32>
    %46 = vector.broadcast %44 : vector<1x256xf32> to vector<8x256xf32>
    %47 = arith.mulf %45, %46 : vector<8x256xf32>
    %c0_18 = arith.constant 0 : index
    %c0_19 = arith.constant 0 : index
    %c0_20 = arith.constant 0 : index
    %48 = vector.load %arg6[%c0_18, %c0_19, %c0_20] : memref<5x8x1xf32, #tpu.memory_space<vmem>>, vector<1x8x1xf32>
    %49 = vector.shape_cast %48 : vector<1x8x1xf32> to vector<8x1xf32>
    %50 = vector.broadcast %49 : vector<8x1xf32> to vector<8x256xf32>
    %51 = arith.mulf %47, %50 : vector<8x256xf32>
    %52 = arith.addf %35, %51 : vector<8x256xf32>
    %c0_21 = arith.constant 0 : index
    %c0_22 = arith.constant 0 : index
    %c0_23 = arith.constant 0 : index
    %53 = vector.load %arg3[%c0_21, %c0_22, %c0_23] : memref<5x1x256xf32, #tpu.memory_space<vmem>>, vector<1x1x256xf32>
    %54 = vector.shape_cast %53 : vector<1x1x256xf32> to vector<1x256xf32>
    %c2_i32 = arith.constant 2 : i32
    %55 = tpu.dynamic_rotate %28 by %c2_i32 dim 1 : vector<8x256xf32>, i32 -> vector<8x256xf32>
    %56 = vector.broadcast %54 : vector<1x256xf32> to vector<8x256xf32>
    %57 = arith.mulf %55, %56 : vector<8x256xf32>
    %c0_24 = arith.constant 0 : index
    %c0_25 = arith.constant 0 : index
    %c0_26 = arith.constant 0 : index
    %58 = vector.load %arg8[%c0_24, %c0_25, %c0_26] : memref<5x8x1xf32, #tpu.memory_space<vmem>>, vector<1x8x1xf32>
    %59 = vector.shape_cast %58 : vector<1x8x1xf32> to vector<8x1xf32>
    %60 = vector.broadcast %59 : vector<8x1xf32> to vector<8x256xf32>
    %61 = arith.mulf %57, %60 : vector<8x256xf32>
    %62 = arith.addf %42, %61 : vector<8x256xf32>
    %c1 = arith.constant 1 : index
    %c0_27 = arith.constant 0 : index
    %c0_28 = arith.constant 0 : index
    %63 = vector.load %arg2[%c1, %c0_27, %c0_28] : memref<5x1x256xf32, #tpu.memory_space<vmem>>, vector<1x1x256xf32>
    %64 = vector.shape_cast %63 : vector<1x1x256xf32> to vector<1x256xf32>
    %c16_i32 = arith.constant 16 : i32
    %65 = tpu.dynamic_rotate %28 by %c16_i32 dim 1 : vector<8x256xf32>, i32 -> vector<8x256xf32>
    %66 = vector.broadcast %64 : vector<1x256xf32> to vector<8x256xf32>
    %67 = arith.mulf %65, %66 : vector<8x256xf32>
    %c1_29 = arith.constant 1 : index
    %c0_30 = arith.constant 0 : index
    %c0_31 = arith.constant 0 : index
    %68 = vector.load %arg6[%c1_29, %c0_30, %c0_31] : memref<5x8x1xf32, #tpu.memory_space<vmem>>, vector<1x8x1xf32>
    %69 = vector.shape_cast %68 : vector<1x8x1xf32> to vector<8x1xf32>
    %70 = vector.broadcast %69 : vector<8x1xf32> to vector<8x256xf32>
    %71 = arith.mulf %67, %70 : vector<8x256xf32>
    %72 = arith.addf %52, %71 : vector<8x256xf32>
    %c1_32 = arith.constant 1 : index
    %c0_33 = arith.constant 0 : index
    %c0_34 = arith.constant 0 : index
    %73 = vector.load %arg3[%c1_32, %c0_33, %c0_34] : memref<5x1x256xf32, #tpu.memory_space<vmem>>, vector<1x1x256xf32>
    %74 = vector.shape_cast %73 : vector<1x1x256xf32> to vector<1x256xf32>
    %c1_i32 = arith.constant 1 : i32
    %75 = tpu.dynamic_rotate %28 by %c1_i32 dim 1 : vector<8x256xf32>, i32 -> vector<8x256xf32>
    %76 = vector.broadcast %74 : vector<1x256xf32> to vector<8x256xf32>
    %77 = arith.mulf %75, %76 : vector<8x256xf32>
    %c1_35 = arith.constant 1 : index
    %c0_36 = arith.constant 0 : index
    %c0_37 = arith.constant 0 : index
    %78 = vector.load %arg8[%c1_35, %c0_36, %c0_37] : memref<5x8x1xf32, #tpu.memory_space<vmem>>, vector<1x8x1xf32>
    %79 = vector.shape_cast %78 : vector<1x8x1xf32> to vector<8x1xf32>
    %80 = vector.broadcast %79 : vector<8x1xf32> to vector<8x256xf32>
    %81 = arith.mulf %77, %80 : vector<8x256xf32>
    %82 = arith.addf %62, %81 : vector<8x256xf32>
    %c3 = arith.constant 3 : index
    %c0_38 = arith.constant 0 : index
    %c0_39 = arith.constant 0 : index
    %83 = vector.load %arg2[%c3, %c0_38, %c0_39] : memref<5x1x256xf32, #tpu.memory_space<vmem>>, vector<1x1x256xf32>
    %84 = vector.shape_cast %83 : vector<1x1x256xf32> to vector<1x256xf32>
    %c240_i32 = arith.constant 240 : i32
    %85 = tpu.dynamic_rotate %28 by %c240_i32 dim 1 : vector<8x256xf32>, i32 -> vector<8x256xf32>
    %86 = vector.broadcast %84 : vector<1x256xf32> to vector<8x256xf32>
    %87 = arith.mulf %85, %86 : vector<8x256xf32>
    %c3_40 = arith.constant 3 : index
    %c0_41 = arith.constant 0 : index
    %c0_42 = arith.constant 0 : index
    %88 = vector.load %arg6[%c3_40, %c0_41, %c0_42] : memref<5x8x1xf32, #tpu.memory_space<vmem>>, vector<1x8x1xf32>
    %89 = vector.shape_cast %88 : vector<1x8x1xf32> to vector<8x1xf32>
    %90 = vector.broadcast %89 : vector<8x1xf32> to vector<8x256xf32>
    %91 = arith.mulf %87, %90 : vector<8x256xf32>
    %92 = arith.addf %72, %91 : vector<8x256xf32>
    %c3_43 = arith.constant 3 : index
    %c0_44 = arith.constant 0 : index
    %c0_45 = arith.constant 0 : index
    %93 = vector.load %arg3[%c3_43, %c0_44, %c0_45] : memref<5x1x256xf32, #tpu.memory_space<vmem>>, vector<1x1x256xf32>
    %94 = vector.shape_cast %93 : vector<1x1x256xf32> to vector<1x256xf32>
    %c255_i32 = arith.constant 255 : i32
    %95 = tpu.dynamic_rotate %28 by %c255_i32 dim 1 : vector<8x256xf32>, i32 -> vector<8x256xf32>
    %96 = vector.broadcast %94 : vector<1x256xf32> to vector<8x256xf32>
    %97 = arith.mulf %95, %96 : vector<8x256xf32>
    %c3_46 = arith.constant 3 : index
    %c0_47 = arith.constant 0 : index
    %c0_48 = arith.constant 0 : index
    %98 = vector.load %arg8[%c3_46, %c0_47, %c0_48] : memref<5x8x1xf32, #tpu.memory_space<vmem>>, vector<1x8x1xf32>
    %99 = vector.shape_cast %98 : vector<1x8x1xf32> to vector<8x1xf32>
    %100 = vector.broadcast %99 : vector<8x1xf32> to vector<8x256xf32>
    %101 = arith.mulf %97, %100 : vector<8x256xf32>
    %102 = arith.addf %82, %101 : vector<8x256xf32>
    %c4 = arith.constant 4 : index
    %c0_49 = arith.constant 0 : index
    %c0_50 = arith.constant 0 : index
    %103 = vector.load %arg2[%c4, %c0_49, %c0_50] : memref<5x1x256xf32, #tpu.memory_space<vmem>>, vector<1x1x256xf32>
    %104 = vector.shape_cast %103 : vector<1x1x256xf32> to vector<1x256xf32>
    %c224_i32 = arith.constant 224 : i32
    %105 = tpu.dynamic_rotate %28 by %c224_i32 dim 1 : vector<8x256xf32>, i32 -> vector<8x256xf32>
    %106 = vector.broadcast %104 : vector<1x256xf32> to vector<8x256xf32>
    %107 = arith.mulf %105, %106 : vector<8x256xf32>
    %c4_51 = arith.constant 4 : index
    %c0_52 = arith.constant 0 : index
    %c0_53 = arith.constant 0 : index
    %108 = vector.load %arg6[%c4_51, %c0_52, %c0_53] : memref<5x8x1xf32, #tpu.memory_space<vmem>>, vector<1x8x1xf32>
    %109 = vector.shape_cast %108 : vector<1x8x1xf32> to vector<8x1xf32>
    %110 = vector.broadcast %109 : vector<8x1xf32> to vector<8x256xf32>
    %111 = arith.mulf %107, %110 : vector<8x256xf32>
    %112 = arith.addf %92, %111 : vector<8x256xf32>
    %c4_54 = arith.constant 4 : index
    %c0_55 = arith.constant 0 : index
    %c0_56 = arith.constant 0 : index
    %113 = vector.load %arg3[%c4_54, %c0_55, %c0_56] : memref<5x1x256xf32, #tpu.memory_space<vmem>>, vector<1x1x256xf32>
    %114 = vector.shape_cast %113 : vector<1x1x256xf32> to vector<1x256xf32>
    %c254_i32 = arith.constant 254 : i32
    %115 = tpu.dynamic_rotate %28 by %c254_i32 dim 1 : vector<8x256xf32>, i32 -> vector<8x256xf32>
    %116 = vector.broadcast %114 : vector<1x256xf32> to vector<8x256xf32>
    %117 = arith.mulf %115, %116 : vector<8x256xf32>
    %c4_57 = arith.constant 4 : index
    %c0_58 = arith.constant 0 : index
    %c0_59 = arith.constant 0 : index
    %118 = vector.load %arg8[%c4_57, %c0_58, %c0_59] : memref<5x8x1xf32, #tpu.memory_space<vmem>>, vector<1x8x1xf32>
    %119 = vector.shape_cast %118 : vector<1x8x1xf32> to vector<8x1xf32>
    %120 = vector.broadcast %119 : vector<8x1xf32> to vector<8x256xf32>
    %121 = arith.mulf %117, %120 : vector<8x256xf32>
    %122 = arith.addf %102, %121 : vector<8x256xf32>
    %c0_60 = arith.constant 0 : index
    %c0_61 = arith.constant 0 : index
    %123 = vector.load %arg13[%c0_60, %c0_61] : memref<8x1xf32, #tpu.memory_space<vmem>>, vector<8x1xf32>
    %c0_62 = arith.constant 0 : index
    %c0_63 = arith.constant 0 : index
    %124 = vector.load %arg12[%c0_62, %c0_63] : memref<8x8xf32, #tpu.memory_space<vmem>>, vector<8x8xf32>
    %125 = vector.extract_strided_slice %124 {offsets = [0, 0], sizes = [8, 1], strides = [1, 1]} : vector<8x8xf32> to vector<8x1xf32>
    %126 = vector.extract_strided_slice %122 {offsets = [0, 0], sizes = [1, 256], strides = [1, 1]} : vector<8x256xf32> to vector<1x256xf32>
    %127 = vector.broadcast %125 : vector<8x1xf32> to vector<8x256xf32>
    %128 = vector.broadcast %126 : vector<1x256xf32> to vector<8x256xf32>
    %129 = arith.mulf %127, %128 : vector<8x256xf32>
    %130 = vector.broadcast %123 : vector<8x1xf32> to vector<8x256xf32>
    %131 = arith.addf %130, %129 : vector<8x256xf32>
    %132 = vector.extract_strided_slice %124 {offsets = [0, 1], sizes = [8, 1], strides = [1, 1]} : vector<8x8xf32> to vector<8x1xf32>
    %133 = vector.extract_strided_slice %122 {offsets = [1, 0], sizes = [1, 256], strides = [1, 1]} : vector<8x256xf32> to vector<1x256xf32>
    %134 = vector.broadcast %132 : vector<8x1xf32> to vector<8x256xf32>
    %135 = vector.broadcast %133 : vector<1x256xf32> to vector<8x256xf32>
    %136 = arith.mulf %134, %135 : vector<8x256xf32>
    %137 = arith.addf %131, %136 : vector<8x256xf32>
    %138 = vector.extract_strided_slice %124 {offsets = [0, 2], sizes = [8, 1], strides = [1, 1]} : vector<8x8xf32> to vector<8x1xf32>
    %139 = vector.extract_strided_slice %122 {offsets = [2, 0], sizes = [1, 256], strides = [1, 1]} : vector<8x256xf32> to vector<1x256xf32>
    %140 = vector.broadcast %138 : vector<8x1xf32> to vector<8x256xf32>
    %141 = vector.broadcast %139 : vector<1x256xf32> to vector<8x256xf32>
    %142 = arith.mulf %140, %141 : vector<8x256xf32>
    %143 = arith.addf %137, %142 : vector<8x256xf32>
    %144 = vector.extract_strided_slice %124 {offsets = [0, 3], sizes = [8, 1], strides = [1, 1]} : vector<8x8xf32> to vector<8x1xf32>
    %145 = vector.extract_strided_slice %122 {offsets = [3, 0], sizes = [1, 256], strides = [1, 1]} : vector<8x256xf32> to vector<1x256xf32>
    %146 = vector.broadcast %144 : vector<8x1xf32> to vector<8x256xf32>
    %147 = vector.broadcast %145 : vector<1x256xf32> to vector<8x256xf32>
    %148 = arith.mulf %146, %147 : vector<8x256xf32>
    %149 = arith.addf %143, %148 : vector<8x256xf32>
    %150 = vector.extract_strided_slice %124 {offsets = [0, 4], sizes = [8, 1], strides = [1, 1]} : vector<8x8xf32> to vector<8x1xf32>
    %151 = vector.extract_strided_slice %122 {offsets = [4, 0], sizes = [1, 256], strides = [1, 1]} : vector<8x256xf32> to vector<1x256xf32>
    %152 = vector.broadcast %150 : vector<8x1xf32> to vector<8x256xf32>
    %153 = vector.broadcast %151 : vector<1x256xf32> to vector<8x256xf32>
    %154 = arith.mulf %152, %153 : vector<8x256xf32>
    %155 = arith.addf %149, %154 : vector<8x256xf32>
    %156 = vector.extract_strided_slice %124 {offsets = [0, 5], sizes = [8, 1], strides = [1, 1]} : vector<8x8xf32> to vector<8x1xf32>
    %157 = vector.extract_strided_slice %122 {offsets = [5, 0], sizes = [1, 256], strides = [1, 1]} : vector<8x256xf32> to vector<1x256xf32>
    %158 = vector.broadcast %156 : vector<8x1xf32> to vector<8x256xf32>
    %159 = vector.broadcast %157 : vector<1x256xf32> to vector<8x256xf32>
    %160 = arith.mulf %158, %159 : vector<8x256xf32>
    %161 = arith.addf %155, %160 : vector<8x256xf32>
    %162 = vector.extract_strided_slice %124 {offsets = [0, 6], sizes = [8, 1], strides = [1, 1]} : vector<8x8xf32> to vector<8x1xf32>
    %163 = vector.extract_strided_slice %122 {offsets = [6, 0], sizes = [1, 256], strides = [1, 1]} : vector<8x256xf32> to vector<1x256xf32>
    %164 = vector.broadcast %162 : vector<8x1xf32> to vector<8x256xf32>
    %165 = vector.broadcast %163 : vector<1x256xf32> to vector<8x256xf32>
    %166 = arith.mulf %164, %165 : vector<8x256xf32>
    %167 = arith.addf %161, %166 : vector<8x256xf32>
    %168 = vector.extract_strided_slice %124 {offsets = [0, 7], sizes = [8, 1], strides = [1, 1]} : vector<8x8xf32> to vector<8x1xf32>
    %169 = vector.extract_strided_slice %122 {offsets = [7, 0], sizes = [1, 256], strides = [1, 1]} : vector<8x256xf32> to vector<1x256xf32>
    %170 = vector.broadcast %168 : vector<8x1xf32> to vector<8x256xf32>
    %171 = vector.broadcast %169 : vector<1x256xf32> to vector<8x256xf32>
    %172 = arith.mulf %170, %171 : vector<8x256xf32>
    %173 = arith.addf %167, %172 : vector<8x256xf32>
    %174 = arith.negf %173 : vector<8x256xf32>
    %175 = math.exp %174 : vector<8x256xf32>
    %cst = arith.constant 1.000000e+00 : f32
    %176 = vector.broadcast %cst : f32 to vector<8x256xf32>
    %177 = arith.addf %176, %175 : vector<8x256xf32>
    %178 = arith.divf %176, %177 : vector<8x256xf32>
    %c0_64 = arith.constant 0 : index
    %c0_65 = arith.constant 0 : index
    %179 = vector.load %arg15[%c0_64, %c0_65] : memref<8x1xf32, #tpu.memory_space<vmem>>, vector<8x1xf32>
    %c0_66 = arith.constant 0 : index
    %c0_67 = arith.constant 0 : index
    %180 = vector.load %arg14[%c0_66, %c0_67] : memref<8x8xf32, #tpu.memory_space<vmem>>, vector<8x8xf32>
    %181 = vector.extract_strided_slice %180 {offsets = [0, 0], sizes = [8, 1], strides = [1, 1]} : vector<8x8xf32> to vector<8x1xf32>
    %182 = vector.extract_strided_slice %112 {offsets = [0, 0], sizes = [1, 256], strides = [1, 1]} : vector<8x256xf32> to vector<1x256xf32>
    %183 = vector.broadcast %181 : vector<8x1xf32> to vector<8x256xf32>
    %184 = vector.broadcast %182 : vector<1x256xf32> to vector<8x256xf32>
    %185 = arith.mulf %183, %184 : vector<8x256xf32>
    %186 = vector.broadcast %179 : vector<8x1xf32> to vector<8x256xf32>
    %187 = arith.addf %186, %185 : vector<8x256xf32>
    %188 = vector.extract_strided_slice %180 {offsets = [0, 1], sizes = [8, 1], strides = [1, 1]} : vector<8x8xf32> to vector<8x1xf32>
    %189 = vector.extract_strided_slice %112 {offsets = [1, 0], sizes = [1, 256], strides = [1, 1]} : vector<8x256xf32> to vector<1x256xf32>
    %190 = vector.broadcast %188 : vector<8x1xf32> to vector<8x256xf32>
    %191 = vector.broadcast %189 : vector<1x256xf32> to vector<8x256xf32>
    %192 = arith.mulf %190, %191 : vector<8x256xf32>
    %193 = arith.addf %187, %192 : vector<8x256xf32>
    %194 = vector.extract_strided_slice %180 {offsets = [0, 2], sizes = [8, 1], strides = [1, 1]} : vector<8x8xf32> to vector<8x1xf32>
    %195 = vector.extract_strided_slice %112 {offsets = [2, 0], sizes = [1, 256], strides = [1, 1]} : vector<8x256xf32> to vector<1x256xf32>
    %196 = vector.broadcast %194 : vector<8x1xf32> to vector<8x256xf32>
    %197 = vector.broadcast %195 : vector<1x256xf32> to vector<8x256xf32>
    %198 = arith.mulf %196, %197 : vector<8x256xf32>
    %199 = arith.addf %193, %198 : vector<8x256xf32>
    %200 = vector.extract_strided_slice %180 {offsets = [0, 3], sizes = [8, 1], strides = [1, 1]} : vector<8x8xf32> to vector<8x1xf32>
    %201 = vector.extract_strided_slice %112 {offsets = [3, 0], sizes = [1, 256], strides = [1, 1]} : vector<8x256xf32> to vector<1x256xf32>
    %202 = vector.broadcast %200 : vector<8x1xf32> to vector<8x256xf32>
    %203 = vector.broadcast %201 : vector<1x256xf32> to vector<8x256xf32>
    %204 = arith.mulf %202, %203 : vector<8x256xf32>
    %205 = arith.addf %199, %204 : vector<8x256xf32>
    %206 = vector.extract_strided_slice %180 {offsets = [0, 4], sizes = [8, 1], strides = [1, 1]} : vector<8x8xf32> to vector<8x1xf32>
    %207 = vector.extract_strided_slice %112 {offsets = [4, 0], sizes = [1, 256], strides = [1, 1]} : vector<8x256xf32> to vector<1x256xf32>
    %208 = vector.broadcast %206 : vector<8x1xf32> to vector<8x256xf32>
    %209 = vector.broadcast %207 : vector<1x256xf32> to vector<8x256xf32>
    %210 = arith.mulf %208, %209 : vector<8x256xf32>
    %211 = arith.addf %205, %210 : vector<8x256xf32>
    %212 = vector.extract_strided_slice %180 {offsets = [0, 5], sizes = [8, 1], strides = [1, 1]} : vector<8x8xf32> to vector<8x1xf32>
    %213 = vector.extract_strided_slice %112 {offsets = [5, 0], sizes = [1, 256], strides = [1, 1]} : vector<8x256xf32> to vector<1x256xf32>
    %214 = vector.broadcast %212 : vector<8x1xf32> to vector<8x256xf32>
    %215 = vector.broadcast %213 : vector<1x256xf32> to vector<8x256xf32>
    %216 = arith.mulf %214, %215 : vector<8x256xf32>
    %217 = arith.addf %211, %216 : vector<8x256xf32>
    %218 = vector.extract_strided_slice %180 {offsets = [0, 6], sizes = [8, 1], strides = [1, 1]} : vector<8x8xf32> to vector<8x1xf32>
    %219 = vector.extract_strided_slice %112 {offsets = [6, 0], sizes = [1, 256], strides = [1, 1]} : vector<8x256xf32> to vector<1x256xf32>
    %220 = vector.broadcast %218 : vector<8x1xf32> to vector<8x256xf32>
    %221 = vector.broadcast %219 : vector<1x256xf32> to vector<8x256xf32>
    %222 = arith.mulf %220, %221 : vector<8x256xf32>
    %223 = arith.addf %217, %222 : vector<8x256xf32>
    %224 = vector.extract_strided_slice %180 {offsets = [0, 7], sizes = [8, 1], strides = [1, 1]} : vector<8x8xf32> to vector<8x1xf32>
    %225 = vector.extract_strided_slice %112 {offsets = [7, 0], sizes = [1, 256], strides = [1, 1]} : vector<8x256xf32> to vector<1x256xf32>
    %226 = vector.broadcast %224 : vector<8x1xf32> to vector<8x256xf32>
    %227 = vector.broadcast %225 : vector<1x256xf32> to vector<8x256xf32>
    %228 = arith.mulf %226, %227 : vector<8x256xf32>
    %229 = arith.addf %223, %228 : vector<8x256xf32>
    %230 = arith.negf %229 : vector<8x256xf32>
    %231 = math.exp %230 : vector<8x256xf32>
    %cst_68 = arith.constant 1.000000e+00 : f32
    %232 = vector.broadcast %cst_68 : f32 to vector<8x256xf32>
    %233 = arith.addf %232, %231 : vector<8x256xf32>
    %234 = arith.divf %232, %233 : vector<8x256xf32>
    %235 = arith.mulf %112, %178 : vector<8x256xf32>
    %236 = arith.mulf %122, %234 : vector<8x256xf32>
    %cst_69 = arith.constant 0.000000e+00 : f32
    %237 = vector.broadcast %cst_69 : f32 to vector<4x256xf32>
    %238 = tpu.concatenate %1, %237 in 0 : vector<4x256xf32>, vector<4x256xf32> -> vector<8x256xf32>
    %c0_70 = arith.constant 0 : index
    %c0_71 = arith.constant 0 : index
    %c0_72 = arith.constant 0 : index
    %239 = vector.load %arg11[%c0_70, %c0_71, %c0_72] : memref<2x4x1xf32, #tpu.memory_space<vmem>>, vector<1x4x1xf32>
    %240 = vector.shape_cast %239 : vector<1x4x1xf32> to vector<4x1xf32>
    %c1_73 = arith.constant 1 : index
    %c0_74 = arith.constant 0 : index
    %c0_75 = arith.constant 0 : index
    %241 = vector.load %arg11[%c1_73, %c0_74, %c0_75] : memref<2x4x1xf32, #tpu.memory_space<vmem>>, vector<1x4x1xf32>
    %242 = vector.shape_cast %241 : vector<1x4x1xf32> to vector<4x1xf32>
    %c1_76 = arith.constant 1 : index
    %c0_77 = arith.constant 0 : index
    %c0_78 = arith.constant 0 : index
    %243 = vector.load %arg2[%c1_76, %c0_77, %c0_78] : memref<5x1x256xf32, #tpu.memory_space<vmem>>, vector<1x1x256xf32>
    %244 = vector.shape_cast %243 : vector<1x1x256xf32> to vector<1x256xf32>
    %c1_79 = arith.constant 1 : index
    %c0_80 = arith.constant 0 : index
    %c0_81 = arith.constant 0 : index
    %245 = vector.load %arg3[%c1_79, %c0_80, %c0_81] : memref<5x1x256xf32, #tpu.memory_space<vmem>>, vector<1x1x256xf32>
    %246 = vector.shape_cast %245 : vector<1x1x256xf32> to vector<1x256xf32>
    %247 = arith.mulf %244, %246 : vector<1x256xf32>
    %c17_i32 = arith.constant 17 : i32
    %248 = tpu.dynamic_rotate %238 by %c17_i32 dim 1 : vector<8x256xf32>, i32 -> vector<8x256xf32>
    %249 = vector.extract_strided_slice %248 {offsets = [0, 0], sizes = [4, 256], strides = [1, 1]} : vector<8x256xf32> to vector<4x256xf32>
    %250 = vector.broadcast %247 : vector<1x256xf32> to vector<4x256xf32>
    %251 = arith.mulf %249, %250 : vector<4x256xf32>
    %c0_82 = arith.constant 0 : index
    %c0_83 = arith.constant 0 : index
    %c0_84 = arith.constant 0 : index
    %252 = vector.load %arg10[%c0_82, %c0_83, %c0_84] : memref<18x4x1xf32, #tpu.memory_space<vmem>>, vector<1x4x1xf32>
    %253 = vector.shape_cast %252 : vector<1x4x1xf32> to vector<4x1xf32>
    %254 = vector.broadcast %253 : vector<4x1xf32> to vector<4x256xf32>
    %255 = arith.mulf %254, %251 : vector<4x256xf32>
    %256 = vector.broadcast %240 : vector<4x1xf32> to vector<4x256xf32>
    %257 = arith.addf %256, %255 : vector<4x256xf32>
    %c9 = arith.constant 9 : index
    %c0_85 = arith.constant 0 : index
    %c0_86 = arith.constant 0 : index
    %258 = vector.load %arg10[%c9, %c0_85, %c0_86] : memref<18x4x1xf32, #tpu.memory_space<vmem>>, vector<1x4x1xf32>
    %259 = vector.shape_cast %258 : vector<1x4x1xf32> to vector<4x1xf32>
    %260 = vector.broadcast %259 : vector<4x1xf32> to vector<4x256xf32>
    %261 = arith.mulf %260, %251 : vector<4x256xf32>
    %262 = vector.broadcast %242 : vector<4x1xf32> to vector<4x256xf32>
    %263 = arith.addf %262, %261 : vector<4x256xf32>
    %c1_87 = arith.constant 1 : index
    %c0_88 = arith.constant 0 : index
    %c0_89 = arith.constant 0 : index
    %264 = vector.load %arg2[%c1_87, %c0_88, %c0_89] : memref<5x1x256xf32, #tpu.memory_space<vmem>>, vector<1x1x256xf32>
    %265 = vector.shape_cast %264 : vector<1x1x256xf32> to vector<1x256xf32>
    %c16_i32_90 = arith.constant 16 : i32
    %266 = tpu.dynamic_rotate %238 by %c16_i32_90 dim 1 : vector<8x256xf32>, i32 -> vector<8x256xf32>
    %267 = vector.extract_strided_slice %266 {offsets = [0, 0], sizes = [4, 256], strides = [1, 1]} : vector<8x256xf32> to vector<4x256xf32>
    %268 = vector.broadcast %265 : vector<1x256xf32> to vector<4x256xf32>
    %269 = arith.mulf %267, %268 : vector<4x256xf32>
    %c1_91 = arith.constant 1 : index
    %c0_92 = arith.constant 0 : index
    %c0_93 = arith.constant 0 : index
    %270 = vector.load %arg10[%c1_91, %c0_92, %c0_93] : memref<18x4x1xf32, #tpu.memory_space<vmem>>, vector<1x4x1xf32>
    %271 = vector.shape_cast %270 : vector<1x4x1xf32> to vector<4x1xf32>
    %272 = vector.broadcast %271 : vector<4x1xf32> to vector<4x256xf32>
    %273 = arith.mulf %272, %269 : vector<4x256xf32>
    %274 = arith.addf %257, %273 : vector<4x256xf32>
    %c10 = arith.constant 10 : index
    %c0_94 = arith.constant 0 : index
    %c0_95 = arith.constant 0 : index
    %275 = vector.load %arg10[%c10, %c0_94, %c0_95] : memref<18x4x1xf32, #tpu.memory_space<vmem>>, vector<1x4x1xf32>
    %276 = vector.shape_cast %275 : vector<1x4x1xf32> to vector<4x1xf32>
    %277 = vector.broadcast %276 : vector<4x1xf32> to vector<4x256xf32>
    %278 = arith.mulf %277, %269 : vector<4x256xf32>
    %279 = arith.addf %263, %278 : vector<4x256xf32>
    %c1_96 = arith.constant 1 : index
    %c0_97 = arith.constant 0 : index
    %c0_98 = arith.constant 0 : index
    %280 = vector.load %arg2[%c1_96, %c0_97, %c0_98] : memref<5x1x256xf32, #tpu.memory_space<vmem>>, vector<1x1x256xf32>
    %281 = vector.shape_cast %280 : vector<1x1x256xf32> to vector<1x256xf32>
    %c3_99 = arith.constant 3 : index
    %c0_100 = arith.constant 0 : index
    %c0_101 = arith.constant 0 : index
    %282 = vector.load %arg3[%c3_99, %c0_100, %c0_101] : memref<5x1x256xf32, #tpu.memory_space<vmem>>, vector<1x1x256xf32>
    %283 = vector.shape_cast %282 : vector<1x1x256xf32> to vector<1x256xf32>
    %284 = arith.mulf %281, %283 : vector<1x256xf32>
    %c15_i32 = arith.constant 15 : i32
    %285 = tpu.dynamic_rotate %238 by %c15_i32 dim 1 : vector<8x256xf32>, i32 -> vector<8x256xf32>
    %286 = vector.extract_strided_slice %285 {offsets = [0, 0], sizes = [4, 256], strides = [1, 1]} : vector<8x256xf32> to vector<4x256xf32>
    %287 = vector.broadcast %284 : vector<1x256xf32> to vector<4x256xf32>
    %288 = arith.mulf %286, %287 : vector<4x256xf32>
    %c2_102 = arith.constant 2 : index
    %c0_103 = arith.constant 0 : index
    %c0_104 = arith.constant 0 : index
    %289 = vector.load %arg10[%c2_102, %c0_103, %c0_104] : memref<18x4x1xf32, #tpu.memory_space<vmem>>, vector<1x4x1xf32>
    %290 = vector.shape_cast %289 : vector<1x4x1xf32> to vector<4x1xf32>
    %291 = vector.broadcast %290 : vector<4x1xf32> to vector<4x256xf32>
    %292 = arith.mulf %291, %288 : vector<4x256xf32>
    %293 = arith.addf %274, %292 : vector<4x256xf32>
    %c11 = arith.constant 11 : index
    %c0_105 = arith.constant 0 : index
    %c0_106 = arith.constant 0 : index
    %294 = vector.load %arg10[%c11, %c0_105, %c0_106] : memref<18x4x1xf32, #tpu.memory_space<vmem>>, vector<1x4x1xf32>
    %295 = vector.shape_cast %294 : vector<1x4x1xf32> to vector<4x1xf32>
    %296 = vector.broadcast %295 : vector<4x1xf32> to vector<4x256xf32>
    %297 = arith.mulf %296, %288 : vector<4x256xf32>
    %298 = arith.addf %279, %297 : vector<4x256xf32>
    %c1_107 = arith.constant 1 : index
    %c0_108 = arith.constant 0 : index
    %c0_109 = arith.constant 0 : index
    %299 = vector.load %arg3[%c1_107, %c0_108, %c0_109] : memref<5x1x256xf32, #tpu.memory_space<vmem>>, vector<1x1x256xf32>
    %300 = vector.shape_cast %299 : vector<1x1x256xf32> to vector<1x256xf32>
    %c1_i32_110 = arith.constant 1 : i32
    %301 = tpu.dynamic_rotate %238 by %c1_i32_110 dim 1 : vector<8x256xf32>, i32 -> vector<8x256xf32>
    %302 = vector.extract_strided_slice %301 {offsets = [0, 0], sizes = [4, 256], strides = [1, 1]} : vector<8x256xf32> to vector<4x256xf32>
    %303 = vector.broadcast %300 : vector<1x256xf32> to vector<4x256xf32>
    %304 = arith.mulf %302, %303 : vector<4x256xf32>
    %c3_111 = arith.constant 3 : index
    %c0_112 = arith.constant 0 : index
    %c0_113 = arith.constant 0 : index
    %305 = vector.load %arg10[%c3_111, %c0_112, %c0_113] : memref<18x4x1xf32, #tpu.memory_space<vmem>>, vector<1x4x1xf32>
    %306 = vector.shape_cast %305 : vector<1x4x1xf32> to vector<4x1xf32>
    %307 = vector.broadcast %306 : vector<4x1xf32> to vector<4x256xf32>
    %308 = arith.mulf %307, %304 : vector<4x256xf32>
    %309 = arith.addf %293, %308 : vector<4x256xf32>
    %c12 = arith.constant 12 : index
    %c0_114 = arith.constant 0 : index
    %c0_115 = arith.constant 0 : index
    %310 = vector.load %arg10[%c12, %c0_114, %c0_115] : memref<18x4x1xf32, #tpu.memory_space<vmem>>, vector<1x4x1xf32>
    %311 = vector.shape_cast %310 : vector<1x4x1xf32> to vector<4x1xf32>
    %312 = vector.broadcast %311 : vector<4x1xf32> to vector<4x256xf32>
    %313 = arith.mulf %312, %304 : vector<4x256xf32>
    %314 = arith.addf %298, %313 : vector<4x256xf32>
    %c4_116 = arith.constant 4 : index
    %c0_117 = arith.constant 0 : index
    %c0_118 = arith.constant 0 : index
    %315 = vector.load %arg10[%c4_116, %c0_117, %c0_118] : memref<18x4x1xf32, #tpu.memory_space<vmem>>, vector<1x4x1xf32>
    %316 = vector.shape_cast %315 : vector<1x4x1xf32> to vector<4x1xf32>
    %317 = vector.broadcast %316 : vector<4x1xf32> to vector<4x256xf32>
    %318 = arith.mulf %317, %1 : vector<4x256xf32>
    %319 = arith.addf %309, %318 : vector<4x256xf32>
    %c13 = arith.constant 13 : index
    %c0_119 = arith.constant 0 : index
    %c0_120 = arith.constant 0 : index
    %320 = vector.load %arg10[%c13, %c0_119, %c0_120] : memref<18x4x1xf32, #tpu.memory_space<vmem>>, vector<1x4x1xf32>
    %321 = vector.shape_cast %320 : vector<1x4x1xf32> to vector<4x1xf32>
    %322 = vector.broadcast %321 : vector<4x1xf32> to vector<4x256xf32>
    %323 = arith.mulf %322, %1 : vector<4x256xf32>
    %324 = arith.addf %314, %323 : vector<4x256xf32>
    %c3_121 = arith.constant 3 : index
    %c0_122 = arith.constant 0 : index
    %c0_123 = arith.constant 0 : index
    %325 = vector.load %arg3[%c3_121, %c0_122, %c0_123] : memref<5x1x256xf32, #tpu.memory_space<vmem>>, vector<1x1x256xf32>
    %326 = vector.shape_cast %325 : vector<1x1x256xf32> to vector<1x256xf32>
    %c255_i32_124 = arith.constant 255 : i32
    %327 = tpu.dynamic_rotate %238 by %c255_i32_124 dim 1 : vector<8x256xf32>, i32 -> vector<8x256xf32>
    %328 = vector.extract_strided_slice %327 {offsets = [0, 0], sizes = [4, 256], strides = [1, 1]} : vector<8x256xf32> to vector<4x256xf32>
    %329 = vector.broadcast %326 : vector<1x256xf32> to vector<4x256xf32>
    %330 = arith.mulf %328, %329 : vector<4x256xf32>
    %c5 = arith.constant 5 : index
    %c0_125 = arith.constant 0 : index
    %c0_126 = arith.constant 0 : index
    %331 = vector.load %arg10[%c5, %c0_125, %c0_126] : memref<18x4x1xf32, #tpu.memory_space<vmem>>, vector<1x4x1xf32>
    %332 = vector.shape_cast %331 : vector<1x4x1xf32> to vector<4x1xf32>
    %333 = vector.broadcast %332 : vector<4x1xf32> to vector<4x256xf32>
    %334 = arith.mulf %333, %330 : vector<4x256xf32>
    %335 = arith.addf %319, %334 : vector<4x256xf32>
    %c14 = arith.constant 14 : index
    %c0_127 = arith.constant 0 : index
    %c0_128 = arith.constant 0 : index
    %336 = vector.load %arg10[%c14, %c0_127, %c0_128] : memref<18x4x1xf32, #tpu.memory_space<vmem>>, vector<1x4x1xf32>
    %337 = vector.shape_cast %336 : vector<1x4x1xf32> to vector<4x1xf32>
    %338 = vector.broadcast %337 : vector<4x1xf32> to vector<4x256xf32>
    %339 = arith.mulf %338, %330 : vector<4x256xf32>
    %340 = arith.addf %324, %339 : vector<4x256xf32>
    %c3_129 = arith.constant 3 : index
    %c0_130 = arith.constant 0 : index
    %c0_131 = arith.constant 0 : index
    %341 = vector.load %arg2[%c3_129, %c0_130, %c0_131] : memref<5x1x256xf32, #tpu.memory_space<vmem>>, vector<1x1x256xf32>
    %342 = vector.shape_cast %341 : vector<1x1x256xf32> to vector<1x256xf32>
    %c1_132 = arith.constant 1 : index
    %c0_133 = arith.constant 0 : index
    %c0_134 = arith.constant 0 : index
    %343 = vector.load %arg3[%c1_132, %c0_133, %c0_134] : memref<5x1x256xf32, #tpu.memory_space<vmem>>, vector<1x1x256xf32>
    %344 = vector.shape_cast %343 : vector<1x1x256xf32> to vector<1x256xf32>
    %345 = arith.mulf %342, %344 : vector<1x256xf32>
    %c241_i32 = arith.constant 241 : i32
    %346 = tpu.dynamic_rotate %238 by %c241_i32 dim 1 : vector<8x256xf32>, i32 -> vector<8x256xf32>
    %347 = vector.extract_strided_slice %346 {offsets = [0, 0], sizes = [4, 256], strides = [1, 1]} : vector<8x256xf32> to vector<4x256xf32>
    %348 = vector.broadcast %345 : vector<1x256xf32> to vector<4x256xf32>
    %349 = arith.mulf %347, %348 : vector<4x256xf32>
    %c6 = arith.constant 6 : index
    %c0_135 = arith.constant 0 : index
    %c0_136 = arith.constant 0 : index
    %350 = vector.load %arg10[%c6, %c0_135, %c0_136] : memref<18x4x1xf32, #tpu.memory_space<vmem>>, vector<1x4x1xf32>
    %351 = vector.shape_cast %350 : vector<1x4x1xf32> to vector<4x1xf32>
    %352 = vector.broadcast %351 : vector<4x1xf32> to vector<4x256xf32>
    %353 = arith.mulf %352, %349 : vector<4x256xf32>
    %354 = arith.addf %335, %353 : vector<4x256xf32>
    %c15 = arith.constant 15 : index
    %c0_137 = arith.constant 0 : index
    %c0_138 = arith.constant 0 : index
    %355 = vector.load %arg10[%c15, %c0_137, %c0_138] : memref<18x4x1xf32, #tpu.memory_space<vmem>>, vector<1x4x1xf32>
    %356 = vector.shape_cast %355 : vector<1x4x1xf32> to vector<4x1xf32>
    %357 = vector.broadcast %356 : vector<4x1xf32> to vector<4x256xf32>
    %358 = arith.mulf %357, %349 : vector<4x256xf32>
    %359 = arith.addf %340, %358 : vector<4x256xf32>
    %c3_139 = arith.constant 3 : index
    %c0_140 = arith.constant 0 : index
    %c0_141 = arith.constant 0 : index
    %360 = vector.load %arg2[%c3_139, %c0_140, %c0_141] : memref<5x1x256xf32, #tpu.memory_space<vmem>>, vector<1x1x256xf32>
    %361 = vector.shape_cast %360 : vector<1x1x256xf32> to vector<1x256xf32>
    %c240_i32_142 = arith.constant 240 : i32
    %362 = tpu.dynamic_rotate %238 by %c240_i32_142 dim 1 : vector<8x256xf32>, i32 -> vector<8x256xf32>
    %363 = vector.extract_strided_slice %362 {offsets = [0, 0], sizes = [4, 256], strides = [1, 1]} : vector<8x256xf32> to vector<4x256xf32>
    %364 = vector.broadcast %361 : vector<1x256xf32> to vector<4x256xf32>
    %365 = arith.mulf %363, %364 : vector<4x256xf32>
    %c7 = arith.constant 7 : index
    %c0_143 = arith.constant 0 : index
    %c0_144 = arith.constant 0 : index
    %366 = vector.load %arg10[%c7, %c0_143, %c0_144] : memref<18x4x1xf32, #tpu.memory_space<vmem>>, vector<1x4x1xf32>
    %367 = vector.shape_cast %366 : vector<1x4x1xf32> to vector<4x1xf32>
    %368 = vector.broadcast %367 : vector<4x1xf32> to vector<4x256xf32>
    %369 = arith.mulf %368, %365 : vector<4x256xf32>
    %370 = arith.addf %354, %369 : vector<4x256xf32>
    %c16 = arith.constant 16 : index
    %c0_145 = arith.constant 0 : index
    %c0_146 = arith.constant 0 : index
    %371 = vector.load %arg10[%c16, %c0_145, %c0_146] : memref<18x4x1xf32, #tpu.memory_space<vmem>>, vector<1x4x1xf32>
    %372 = vector.shape_cast %371 : vector<1x4x1xf32> to vector<4x1xf32>
    %373 = vector.broadcast %372 : vector<4x1xf32> to vector<4x256xf32>
    %374 = arith.mulf %373, %365 : vector<4x256xf32>
    %375 = arith.addf %359, %374 : vector<4x256xf32>
    %c3_147 = arith.constant 3 : index
    %c0_148 = arith.constant 0 : index
    %c0_149 = arith.constant 0 : index
    %376 = vector.load %arg2[%c3_147, %c0_148, %c0_149] : memref<5x1x256xf32, #tpu.memory_space<vmem>>, vector<1x1x256xf32>
    %377 = vector.shape_cast %376 : vector<1x1x256xf32> to vector<1x256xf32>
    %c3_150 = arith.constant 3 : index
    %c0_151 = arith.constant 0 : index
    %c0_152 = arith.constant 0 : index
    %378 = vector.load %arg3[%c3_150, %c0_151, %c0_152] : memref<5x1x256xf32, #tpu.memory_space<vmem>>, vector<1x1x256xf32>
    %379 = vector.shape_cast %378 : vector<1x1x256xf32> to vector<1x256xf32>
    %380 = arith.mulf %377, %379 : vector<1x256xf32>
    %c239_i32 = arith.constant 239 : i32
    %381 = tpu.dynamic_rotate %238 by %c239_i32 dim 1 : vector<8x256xf32>, i32 -> vector<8x256xf32>
    %382 = vector.extract_strided_slice %381 {offsets = [0, 0], sizes = [4, 256], strides = [1, 1]} : vector<8x256xf32> to vector<4x256xf32>
    %383 = vector.broadcast %380 : vector<1x256xf32> to vector<4x256xf32>
    %384 = arith.mulf %382, %383 : vector<4x256xf32>
    %c8 = arith.constant 8 : index
    %c0_153 = arith.constant 0 : index
    %c0_154 = arith.constant 0 : index
    %385 = vector.load %arg10[%c8, %c0_153, %c0_154] : memref<18x4x1xf32, #tpu.memory_space<vmem>>, vector<1x4x1xf32>
    %386 = vector.shape_cast %385 : vector<1x4x1xf32> to vector<4x1xf32>
    %387 = vector.broadcast %386 : vector<4x1xf32> to vector<4x256xf32>
    %388 = arith.mulf %387, %384 : vector<4x256xf32>
    %389 = arith.addf %370, %388 : vector<4x256xf32>
    %c17 = arith.constant 17 : index
    %c0_155 = arith.constant 0 : index
    %c0_156 = arith.constant 0 : index
    %390 = vector.load %arg10[%c17, %c0_155, %c0_156] : memref<18x4x1xf32, #tpu.memory_space<vmem>>, vector<1x4x1xf32>
    %391 = vector.shape_cast %390 : vector<1x4x1xf32> to vector<4x1xf32>
    %392 = vector.broadcast %391 : vector<4x1xf32> to vector<4x256xf32>
    %393 = arith.mulf %392, %384 : vector<4x256xf32>
    %394 = arith.addf %375, %393 : vector<4x256xf32>
    %c0_157 = arith.constant 0 : index
    %c0_158 = arith.constant 0 : index
    %395 = vector.load %arg19[%c0_157, %c0_158] : memref<4x1xf32, #tpu.memory_space<vmem>>, vector<4x1xf32>
    %396 = vector.broadcast %395 : vector<4x1xf32> to vector<4x256xf32>
    %397 = arith.addf %396, %1 : vector<4x256xf32>
    %c0_159 = arith.constant 0 : index
    %c0_160 = arith.constant 0 : index
    %398 = vector.load %arg16[%c0_159, %c0_160] : memref<4x8xf32, #tpu.memory_space<vmem>>, vector<4x8xf32>
    %399 = vector.extract_strided_slice %398 {offsets = [0, 0], sizes = [4, 1], strides = [1, 1]} : vector<4x8xf32> to vector<4x1xf32>
    %400 = vector.extract_strided_slice %235 {offsets = [0, 0], sizes = [1, 256], strides = [1, 1]} : vector<8x256xf32> to vector<1x256xf32>
    %401 = vector.broadcast %399 : vector<4x1xf32> to vector<4x256xf32>
    %402 = vector.broadcast %400 : vector<1x256xf32> to vector<4x256xf32>
    %403 = arith.mulf %401, %402 : vector<4x256xf32>
    %404 = arith.addf %397, %403 : vector<4x256xf32>
    %405 = vector.extract_strided_slice %398 {offsets = [0, 1], sizes = [4, 1], strides = [1, 1]} : vector<4x8xf32> to vector<4x1xf32>
    %406 = vector.extract_strided_slice %235 {offsets = [1, 0], sizes = [1, 256], strides = [1, 1]} : vector<8x256xf32> to vector<1x256xf32>
    %407 = vector.broadcast %405 : vector<4x1xf32> to vector<4x256xf32>
    %408 = vector.broadcast %406 : vector<1x256xf32> to vector<4x256xf32>
    %409 = arith.mulf %407, %408 : vector<4x256xf32>
    %410 = arith.addf %404, %409 : vector<4x256xf32>
    %411 = vector.extract_strided_slice %398 {offsets = [0, 2], sizes = [4, 1], strides = [1, 1]} : vector<4x8xf32> to vector<4x1xf32>
    %412 = vector.extract_strided_slice %235 {offsets = [2, 0], sizes = [1, 256], strides = [1, 1]} : vector<8x256xf32> to vector<1x256xf32>
    %413 = vector.broadcast %411 : vector<4x1xf32> to vector<4x256xf32>
    %414 = vector.broadcast %412 : vector<1x256xf32> to vector<4x256xf32>
    %415 = arith.mulf %413, %414 : vector<4x256xf32>
    %416 = arith.addf %410, %415 : vector<4x256xf32>
    %417 = vector.extract_strided_slice %398 {offsets = [0, 3], sizes = [4, 1], strides = [1, 1]} : vector<4x8xf32> to vector<4x1xf32>
    %418 = vector.extract_strided_slice %235 {offsets = [3, 0], sizes = [1, 256], strides = [1, 1]} : vector<8x256xf32> to vector<1x256xf32>
    %419 = vector.broadcast %417 : vector<4x1xf32> to vector<4x256xf32>
    %420 = vector.broadcast %418 : vector<1x256xf32> to vector<4x256xf32>
    %421 = arith.mulf %419, %420 : vector<4x256xf32>
    %422 = arith.addf %416, %421 : vector<4x256xf32>
    %423 = vector.extract_strided_slice %398 {offsets = [0, 4], sizes = [4, 1], strides = [1, 1]} : vector<4x8xf32> to vector<4x1xf32>
    %424 = vector.extract_strided_slice %235 {offsets = [4, 0], sizes = [1, 256], strides = [1, 1]} : vector<8x256xf32> to vector<1x256xf32>
    %425 = vector.broadcast %423 : vector<4x1xf32> to vector<4x256xf32>
    %426 = vector.broadcast %424 : vector<1x256xf32> to vector<4x256xf32>
    %427 = arith.mulf %425, %426 : vector<4x256xf32>
    %428 = arith.addf %422, %427 : vector<4x256xf32>
    %429 = vector.extract_strided_slice %398 {offsets = [0, 5], sizes = [4, 1], strides = [1, 1]} : vector<4x8xf32> to vector<4x1xf32>
    %430 = vector.extract_strided_slice %235 {offsets = [5, 0], sizes = [1, 256], strides = [1, 1]} : vector<8x256xf32> to vector<1x256xf32>
    %431 = vector.broadcast %429 : vector<4x1xf32> to vector<4x256xf32>
    %432 = vector.broadcast %430 : vector<1x256xf32> to vector<4x256xf32>
    %433 = arith.mulf %431, %432 : vector<4x256xf32>
    %434 = arith.addf %428, %433 : vector<4x256xf32>
    %435 = vector.extract_strided_slice %398 {offsets = [0, 6], sizes = [4, 1], strides = [1, 1]} : vector<4x8xf32> to vector<4x1xf32>
    %436 = vector.extract_strided_slice %235 {offsets = [6, 0], sizes = [1, 256], strides = [1, 1]} : vector<8x256xf32> to vector<1x256xf32>
    %437 = vector.broadcast %435 : vector<4x1xf32> to vector<4x256xf32>
    %438 = vector.broadcast %436 : vector<1x256xf32> to vector<4x256xf32>
    %439 = arith.mulf %437, %438 : vector<4x256xf32>
    %440 = arith.addf %434, %439 : vector<4x256xf32>
    %441 = vector.extract_strided_slice %398 {offsets = [0, 7], sizes = [4, 1], strides = [1, 1]} : vector<4x8xf32> to vector<4x1xf32>
    %442 = vector.extract_strided_slice %235 {offsets = [7, 0], sizes = [1, 256], strides = [1, 1]} : vector<8x256xf32> to vector<1x256xf32>
    %443 = vector.broadcast %441 : vector<4x1xf32> to vector<4x256xf32>
    %444 = vector.broadcast %442 : vector<1x256xf32> to vector<4x256xf32>
    %445 = arith.mulf %443, %444 : vector<4x256xf32>
    %446 = arith.addf %440, %445 : vector<4x256xf32>
    %c0_161 = arith.constant 0 : index
    %c0_162 = arith.constant 0 : index
    %447 = vector.load %arg17[%c0_161, %c0_162] : memref<4x8xf32, #tpu.memory_space<vmem>>, vector<4x8xf32>
    %448 = vector.extract_strided_slice %447 {offsets = [0, 0], sizes = [4, 1], strides = [1, 1]} : vector<4x8xf32> to vector<4x1xf32>
    %449 = vector.extract_strided_slice %236 {offsets = [0, 0], sizes = [1, 256], strides = [1, 1]} : vector<8x256xf32> to vector<1x256xf32>
    %450 = vector.broadcast %448 : vector<4x1xf32> to vector<4x256xf32>
    %451 = vector.broadcast %449 : vector<1x256xf32> to vector<4x256xf32>
    %452 = arith.mulf %450, %451 : vector<4x256xf32>
    %453 = arith.addf %446, %452 : vector<4x256xf32>
    %454 = vector.extract_strided_slice %447 {offsets = [0, 1], sizes = [4, 1], strides = [1, 1]} : vector<4x8xf32> to vector<4x1xf32>
    %455 = vector.extract_strided_slice %236 {offsets = [1, 0], sizes = [1, 256], strides = [1, 1]} : vector<8x256xf32> to vector<1x256xf32>
    %456 = vector.broadcast %454 : vector<4x1xf32> to vector<4x256xf32>
    %457 = vector.broadcast %455 : vector<1x256xf32> to vector<4x256xf32>
    %458 = arith.mulf %456, %457 : vector<4x256xf32>
    %459 = arith.addf %453, %458 : vector<4x256xf32>
    %460 = vector.extract_strided_slice %447 {offsets = [0, 2], sizes = [4, 1], strides = [1, 1]} : vector<4x8xf32> to vector<4x1xf32>
    %461 = vector.extract_strided_slice %236 {offsets = [2, 0], sizes = [1, 256], strides = [1, 1]} : vector<8x256xf32> to vector<1x256xf32>
    %462 = vector.broadcast %460 : vector<4x1xf32> to vector<4x256xf32>
    %463 = vector.broadcast %461 : vector<1x256xf32> to vector<4x256xf32>
    %464 = arith.mulf %462, %463 : vector<4x256xf32>
    %465 = arith.addf %459, %464 : vector<4x256xf32>
    %466 = vector.extract_strided_slice %447 {offsets = [0, 3], sizes = [4, 1], strides = [1, 1]} : vector<4x8xf32> to vector<4x1xf32>
    %467 = vector.extract_strided_slice %236 {offsets = [3, 0], sizes = [1, 256], strides = [1, 1]} : vector<8x256xf32> to vector<1x256xf32>
    %468 = vector.broadcast %466 : vector<4x1xf32> to vector<4x256xf32>
    %469 = vector.broadcast %467 : vector<1x256xf32> to vector<4x256xf32>
    %470 = arith.mulf %468, %469 : vector<4x256xf32>
    %471 = arith.addf %465, %470 : vector<4x256xf32>
    %472 = vector.extract_strided_slice %447 {offsets = [0, 4], sizes = [4, 1], strides = [1, 1]} : vector<4x8xf32> to vector<4x1xf32>
    %473 = vector.extract_strided_slice %236 {offsets = [4, 0], sizes = [1, 256], strides = [1, 1]} : vector<8x256xf32> to vector<1x256xf32>
    %474 = vector.broadcast %472 : vector<4x1xf32> to vector<4x256xf32>
    %475 = vector.broadcast %473 : vector<1x256xf32> to vector<4x256xf32>
    %476 = arith.mulf %474, %475 : vector<4x256xf32>
    %477 = arith.addf %471, %476 : vector<4x256xf32>
    %478 = vector.extract_strided_slice %447 {offsets = [0, 5], sizes = [4, 1], strides = [1, 1]} : vector<4x8xf32> to vector<4x1xf32>
    %479 = vector.extract_strided_slice %236 {offsets = [5, 0], sizes = [1, 256], strides = [1, 1]} : vector<8x256xf32> to vector<1x256xf32>
    %480 = vector.broadcast %478 : vector<4x1xf32> to vector<4x256xf32>
    %481 = vector.broadcast %479 : vector<1x256xf32> to vector<4x256xf32>
    %482 = arith.mulf %480, %481 : vector<4x256xf32>
    %483 = arith.addf %477, %482 : vector<4x256xf32>
    %484 = vector.extract_strided_slice %447 {offsets = [0, 6], sizes = [4, 1], strides = [1, 1]} : vector<4x8xf32> to vector<4x1xf32>
    %485 = vector.extract_strided_slice %236 {offsets = [6, 0], sizes = [1, 256], strides = [1, 1]} : vector<8x256xf32> to vector<1x256xf32>
    %486 = vector.broadcast %484 : vector<4x1xf32> to vector<4x256xf32>
    %487 = vector.broadcast %485 : vector<1x256xf32> to vector<4x256xf32>
    %488 = arith.mulf %486, %487 : vector<4x256xf32>
    %489 = arith.addf %483, %488 : vector<4x256xf32>
    %490 = vector.extract_strided_slice %447 {offsets = [0, 7], sizes = [4, 1], strides = [1, 1]} : vector<4x8xf32> to vector<4x1xf32>
    %491 = vector.extract_strided_slice %236 {offsets = [7, 0], sizes = [1, 256], strides = [1, 1]} : vector<8x256xf32> to vector<1x256xf32>
    %492 = vector.broadcast %490 : vector<4x1xf32> to vector<4x256xf32>
    %493 = vector.broadcast %491 : vector<1x256xf32> to vector<4x256xf32>
    %494 = arith.mulf %492, %493 : vector<4x256xf32>
    %495 = arith.addf %489, %494 : vector<4x256xf32>
    %c0_163 = arith.constant 0 : index
    %c0_164 = arith.constant 0 : index
    %c0_165 = arith.constant 0 : index
    %496 = vector.load %arg18[%c0_163, %c0_164, %c0_165] : memref<2x4x4xf32, #tpu.memory_space<vmem>>, vector<1x4x4xf32>
    %497 = vector.shape_cast %496 : vector<1x4x4xf32> to vector<4x4xf32>
    %498 = vector.extract_strided_slice %497 {offsets = [0, 0], sizes = [4, 1], strides = [1, 1]} : vector<4x4xf32> to vector<4x1xf32>
    %499 = vector.extract_strided_slice %389 {offsets = [0, 0], sizes = [1, 256], strides = [1, 1]} : vector<4x256xf32> to vector<1x256xf32>
    %500 = vector.broadcast %498 : vector<4x1xf32> to vector<4x256xf32>
    %501 = vector.broadcast %499 : vector<1x256xf32> to vector<4x256xf32>
    %502 = arith.mulf %500, %501 : vector<4x256xf32>
    %503 = arith.addf %495, %502 : vector<4x256xf32>
    %504 = vector.extract_strided_slice %497 {offsets = [0, 1], sizes = [4, 1], strides = [1, 1]} : vector<4x4xf32> to vector<4x1xf32>
    %505 = vector.extract_strided_slice %389 {offsets = [1, 0], sizes = [1, 256], strides = [1, 1]} : vector<4x256xf32> to vector<1x256xf32>
    %506 = vector.broadcast %504 : vector<4x1xf32> to vector<4x256xf32>
    %507 = vector.broadcast %505 : vector<1x256xf32> to vector<4x256xf32>
    %508 = arith.mulf %506, %507 : vector<4x256xf32>
    %509 = arith.addf %503, %508 : vector<4x256xf32>
    %510 = vector.extract_strided_slice %497 {offsets = [0, 2], sizes = [4, 1], strides = [1, 1]} : vector<4x4xf32> to vector<4x1xf32>
    %511 = vector.extract_strided_slice %389 {offsets = [2, 0], sizes = [1, 256], strides = [1, 1]} : vector<4x256xf32> to vector<1x256xf32>
    %512 = vector.broadcast %510 : vector<4x1xf32> to vector<4x256xf32>
    %513 = vector.broadcast %511 : vector<1x256xf32> to vector<4x256xf32>
    %514 = arith.mulf %512, %513 : vector<4x256xf32>
    %515 = arith.addf %509, %514 : vector<4x256xf32>
    %516 = vector.extract_strided_slice %497 {offsets = [0, 3], sizes = [4, 1], strides = [1, 1]} : vector<4x4xf32> to vector<4x1xf32>
    %517 = vector.extract_strided_slice %389 {offsets = [3, 0], sizes = [1, 256], strides = [1, 1]} : vector<4x256xf32> to vector<1x256xf32>
    %518 = vector.broadcast %516 : vector<4x1xf32> to vector<4x256xf32>
    %519 = vector.broadcast %517 : vector<1x256xf32> to vector<4x256xf32>
    %520 = arith.mulf %518, %519 : vector<4x256xf32>
    %521 = arith.addf %515, %520 : vector<4x256xf32>
    %c1_166 = arith.constant 1 : index
    %c0_167 = arith.constant 0 : index
    %c0_168 = arith.constant 0 : index
    %522 = vector.load %arg18[%c1_166, %c0_167, %c0_168] : memref<2x4x4xf32, #tpu.memory_space<vmem>>, vector<1x4x4xf32>
    %523 = vector.shape_cast %522 : vector<1x4x4xf32> to vector<4x4xf32>
    %524 = vector.extract_strided_slice %523 {offsets = [0, 0], sizes = [4, 1], strides = [1, 1]} : vector<4x4xf32> to vector<4x1xf32>
    %525 = vector.extract_strided_slice %394 {offsets = [0, 0], sizes = [1, 256], strides = [1, 1]} : vector<4x256xf32> to vector<1x256xf32>
    %526 = vector.broadcast %524 : vector<4x1xf32> to vector<4x256xf32>
    %527 = vector.broadcast %525 : vector<1x256xf32> to vector<4x256xf32>
    %528 = arith.mulf %526, %527 : vector<4x256xf32>
    %529 = arith.addf %521, %528 : vector<4x256xf32>
    %530 = vector.extract_strided_slice %523 {offsets = [0, 1], sizes = [4, 1], strides = [1, 1]} : vector<4x4xf32> to vector<4x1xf32>
    %531 = vector.extract_strided_slice %394 {offsets = [1, 0], sizes = [1, 256], strides = [1, 1]} : vector<4x256xf32> to vector<1x256xf32>
    %532 = vector.broadcast %530 : vector<4x1xf32> to vector<4x256xf32>
    %533 = vector.broadcast %531 : vector<1x256xf32> to vector<4x256xf32>
    %534 = arith.mulf %532, %533 : vector<4x256xf32>
    %535 = arith.addf %529, %534 : vector<4x256xf32>
    %536 = vector.extract_strided_slice %523 {offsets = [0, 2], sizes = [4, 1], strides = [1, 1]} : vector<4x4xf32> to vector<4x1xf32>
    %537 = vector.extract_strided_slice %394 {offsets = [2, 0], sizes = [1, 256], strides = [1, 1]} : vector<4x256xf32> to vector<1x256xf32>
    %538 = vector.broadcast %536 : vector<4x1xf32> to vector<4x256xf32>
    %539 = vector.broadcast %537 : vector<1x256xf32> to vector<4x256xf32>
    %540 = arith.mulf %538, %539 : vector<4x256xf32>
    %541 = arith.addf %535, %540 : vector<4x256xf32>
    %542 = vector.extract_strided_slice %523 {offsets = [0, 3], sizes = [4, 1], strides = [1, 1]} : vector<4x4xf32> to vector<4x1xf32>
    %543 = vector.extract_strided_slice %394 {offsets = [3, 0], sizes = [1, 256], strides = [1, 1]} : vector<4x256xf32> to vector<1x256xf32>
    %544 = vector.broadcast %542 : vector<4x1xf32> to vector<4x256xf32>
    %545 = vector.broadcast %543 : vector<1x256xf32> to vector<4x256xf32>
    %546 = arith.mulf %544, %545 : vector<4x256xf32>
    %547 = arith.addf %541, %546 : vector<4x256xf32>
    %c0_169 = arith.constant 0 : index
    %c0_170 = arith.constant 0 : index
    %c0_171 = arith.constant 0 : index
    %548 = vector.load %arg20[%c0_169, %c0_170, %c0_171] : memref<1x4x256xf32, #tpu.memory_space<vmem>>, vector<1x4x256xf32>
    %549 = vector.shape_cast %548 : vector<1x4x256xf32> to vector<4x256xf32>
    %550 = vector.shape_cast %547 : vector<4x256xf32> to vector<1x4x256xf32>
    tpu.vector_store %arg20[%c0_169, %c0_170, %c0_171], %550 {strides = array<i32>} : memref<1x4x256xf32, #tpu.memory_space<vmem>>, vector<1x4x256xf32>,
    %cst_172 = arith.constant dense<0.000000e+00> : vector<4xf32>
    %551 = vector.multi_reduction <add>, %547, %cst_172 [1] : vector<4x256xf32> to vector<4xf32>
    %552 = vector.shape_cast %551 : vector<4xf32> to vector<4x1xf32>
    %553 = arith.mulf %547, %547 : vector<4x256xf32>
    %cst_173 = arith.constant dense<0.000000e+00> : vector<4xf32>
    %554 = vector.multi_reduction <add>, %553, %cst_173 [1] : vector<4x256xf32> to vector<4xf32>
    %555 = vector.shape_cast %554 : vector<4xf32> to vector<4x1xf32>
    %556 = tpu.concatenate %552, %555 in 1 : vector<4x1xf32>, vector<4x1xf32> -> vector<4x2xf32>
    %c0_174 = arith.constant 0 : index
    %c0_175 = arith.constant 0 : index
    %c0_176 = arith.constant 0 : index
    %557 = vector.load %arg21[%c0_174, %c0_175, %c0_176] : memref<1x4x2xf32, #tpu.memory_space<vmem>>, vector<1x4x2xf32>
    %558 = vector.shape_cast %557 : vector<1x4x2xf32> to vector<4x2xf32>
    %559 = vector.shape_cast %556 : vector<4x2xf32> to vector<1x4x2xf32>
    tpu.vector_store %arg21[%c0_174, %c0_175, %c0_176], %559 {strides = array<i32>} : memref<1x4x2xf32, #tpu.memory_space<vmem>>, vector<1x4x2xf32>,
    return
  }
  func.func @transform_0(%arg0: i32) -> (i32, i32, i32) {
    %c0_i32 = arith.constant 0 : i32
    %c0_i32_0 = arith.constant 0 : i32
    %c0_i32_1 = arith.constant 0 : i32
    return %arg0, %c0_i32, %c0_i32_0 : i32, i32, i32
  }
  func.func @transform_1(%arg0: i32) -> (i32, i32, i32) {
    %c0_i32 = arith.constant 0 : i32
    %c0_i32_0 = arith.constant 0 : i32
    %c0_i32_1 = arith.constant 0 : i32
    %c0_i32_2 = arith.constant 0 : i32
    return %c0_i32, %c0_i32_0, %c0_i32_1 : i32, i32, i32
  }
  func.func @transform_2(%arg0: i32) -> (i32, i32, i32) {
    %c0_i32 = arith.constant 0 : i32
    %c0_i32_0 = arith.constant 0 : i32
    %c0_i32_1 = arith.constant 0 : i32
    %c0_i32_2 = arith.constant 0 : i32
    return %c0_i32, %c0_i32_0, %c0_i32_1 : i32, i32, i32
  }
  func.func @transform_3(%arg0: i32) -> (i32, i32) {
    %c0_i32 = arith.constant 0 : i32
    %c0_i32_0 = arith.constant 0 : i32
    %c0_i32_1 = arith.constant 0 : i32
    return %c0_i32, %c0_i32_0 : i32, i32
  }
  func.func @transform_4(%arg0: i32) -> (i32, i32) {
    %c0_i32 = arith.constant 0 : i32
    %c0_i32_0 = arith.constant 0 : i32
    %c0_i32_1 = arith.constant 0 : i32
    return %c0_i32, %c0_i32_0 : i32, i32
  }
  func.func @transform_5(%arg0: i32) -> (i32, i32, i32) {
    %c0_i32 = arith.constant 0 : i32
    %c0_i32_0 = arith.constant 0 : i32
    %c0_i32_1 = arith.constant 0 : i32
    %c0_i32_2 = arith.constant 0 : i32
    return %c0_i32, %c0_i32_0, %c0_i32_1 : i32, i32, i32
  }
  func.func @transform_6(%arg0: i32) -> (i32, i32) {
    %c0_i32 = arith.constant 0 : i32
    %c0_i32_0 = arith.constant 0 : i32
    %c0_i32_1 = arith.constant 0 : i32
    return %c0_i32, %c0_i32_0 : i32, i32
  }
  func.func @transform_7(%arg0: i32) -> (i32, i32, i32) {
    %c0_i32 = arith.constant 0 : i32
    %c0_i32_0 = arith.constant 0 : i32
    %c0_i32_1 = arith.constant 0 : i32
    %c0_i32_2 = arith.constant 0 : i32
    return %c0_i32, %c0_i32_0, %c0_i32_1 : i32, i32, i32
  }
  func.func @transform_8(%arg0: i32) -> (i32, i32) {
    %c0_i32 = arith.constant 0 : i32
    %c0_i32_0 = arith.constant 0 : i32
    %c0_i32_1 = arith.constant 0 : i32
    return %c0_i32, %c0_i32_0 : i32, i32
  }
  func.func @transform_9(%arg0: i32) -> (i32, i32, i32) {
    %c0_i32 = arith.constant 0 : i32
    %c0_i32_0 = arith.constant 0 : i32
    %c0_i32_1 = arith.constant 0 : i32
    %c0_i32_2 = arith.constant 0 : i32
    return %c0_i32, %c0_i32_0, %c0_i32_1 : i32, i32, i32
  }
  func.func @transform_10(%arg0: i32) -> (i32, i32, i32) {
    %c0_i32 = arith.constant 0 : i32
    %c0_i32_0 = arith.constant 0 : i32
    %c0_i32_1 = arith.constant 0 : i32
    %c0_i32_2 = arith.constant 0 : i32
    return %c0_i32, %c0_i32_0, %c0_i32_1 : i32, i32, i32
  }
  func.func @transform_11(%arg0: i32) -> (i32, i32) {
    %c0_i32 = arith.constant 0 : i32
    %c0_i32_0 = arith.constant 0 : i32
    %c0_i32_1 = arith.constant 0 : i32
    return %c0_i32, %c0_i32_0 : i32, i32
  }
  func.func @transform_12(%arg0: i32) -> (i32, i32) {
    %c0_i32 = arith.constant 0 : i32
    %c0_i32_0 = arith.constant 0 : i32
    %c0_i32_1 = arith.constant 0 : i32
    return %c0_i32, %c0_i32_0 : i32, i32
  }
  func.func @transform_13(%arg0: i32) -> (i32, i32) {
    %c0_i32 = arith.constant 0 : i32
    %c0_i32_0 = arith.constant 0 : i32
    %c0_i32_1 = arith.constant 0 : i32
    return %c0_i32, %c0_i32_0 : i32, i32
  }
  func.func @transform_14(%arg0: i32) -> (i32, i32) {
    %c0_i32 = arith.constant 0 : i32
    %c0_i32_0 = arith.constant 0 : i32
    %c0_i32_1 = arith.constant 0 : i32
    return %c0_i32, %c0_i32_0 : i32, i32
  }
  func.func @transform_15(%arg0: i32) -> (i32, i32) {
    %c0_i32 = arith.constant 0 : i32
    %c0_i32_0 = arith.constant 0 : i32
    %c0_i32_1 = arith.constant 0 : i32
    return %c0_i32, %c0_i32_0 : i32, i32
  }
  func.func @transform_16(%arg0: i32) -> (i32, i32) {
    %c0_i32 = arith.constant 0 : i32
    %c0_i32_0 = arith.constant 0 : i32
    %c0_i32_1 = arith.constant 0 : i32
    return %c0_i32, %c0_i32_0 : i32, i32
  }
  func.func @transform_17(%arg0: i32) -> (i32, i32, i32) {
    %c0_i32 = arith.constant 0 : i32
    %c0_i32_0 = arith.constant 0 : i32
    %c0_i32_1 = arith.constant 0 : i32
    %c0_i32_2 = arith.constant 0 : i32
    return %c0_i32, %c0_i32_0, %c0_i32_1 : i32, i32, i32
  }
  func.func @transform_18(%arg0: i32) -> (i32, i32) {
    %c0_i32 = arith.constant 0 : i32
    %c0_i32_0 = arith.constant 0 : i32
    %c0_i32_1 = arith.constant 0 : i32
    return %c0_i32, %c0_i32_0 : i32, i32
  }
  func.func @transform_19(%arg0: i32) -> (i32, i32, i32) {
    %c0_i32 = arith.constant 0 : i32
    %c0_i32_0 = arith.constant 0 : i32
    %c0_i32_1 = arith.constant 0 : i32
    return %arg0, %c0_i32, %c0_i32_0 : i32, i32, i32
  }
  func.func @transform_20(%arg0: i32) -> (i32, i32, i32) {
    %c0_i32 = arith.constant 0 : i32
    %c0_i32_0 = arith.constant 0 : i32
    %c0_i32_1 = arith.constant 0 : i32
    return %arg0, %c0_i32, %c0_i32_0 : i32, i32, i32
  }
}

</mosaic_0001>

<bundles_post_ra>
// kernel: tpu_custom_call.1
= control target key start
LH: loop header
LB: loop body
LE: loop exit
PB: predicated region body
PF: predicated region fallthrough
CT: control target
= control target key end

     0   :  { %s3674_s0 = inlined_call_operand.vmem [shape: f32[2,4,256], index: 0, kind: input, shape index: {}]   ;;  %s3675_s1 = inlined_call_operand.vmem [shape: f32[5,1,256], index: 1, kind: input, shape index: {}]   ;;  %s3676_s2 = inlined_call_operand.vmem [shape: f32[5,1,256], index: 2, kind: input, shape index: {}]   ;;  %s3677_s3 = inlined_call_operand.vmem [shape: f32[8,4], index: 3, kind: input, shape index: {}]   ;;  %s3678_s4 = inlined_call_operand.vmem [shape: f32[8,1], index: 4, kind: input, shape index: {}]   ;;  %s3679_s5 = inlined_call_operand.vmem [shape: f32[5,8,1], index: 5, kind: input, shape index: {}]   ;;  %s3680_s6 = inlined_call_operand.vmem [shape: f32[8,1], index: 6, kind: input, shape index: {}]   ;;  %s3681_s7 = inlined_call_operand.vmem [shape: f32[5,8,1], index: 7, kind: input, shape index: {}]   ;;  %s3682_s8 = inlined_call_operand.vmem [shape: f32[8,1], index: 8, kind: input, shape index: {}]   ;;  %s3683_s9 = inlined_call_operand.vmem [shape: f32[18,4,1], index: 9, kind: input, shape index: {}]   ;;  %s3684_s10 = inlined_call_operand.vmem [shape: f32[2,4,1], index: 10, kind: input, shape index: {}]   ;;  %s3685_s11 = inlined_call_operand.vmem [shape: f32[8,8], index: 11, kind: input, shape index: {}]   ;;  %s3686_s12 = inlined_call_operand.vmem [shape: f32[8,1], index: 12, kind: input, shape index: {}]   ;;  %s3687_s13 = inlined_call_operand.vmem [shape: f32[8,8], index: 13, kind: input, shape index: {}]   ;;  %s3688_s14 = inlined_call_operand.vmem [shape: f32[8,1], index: 14, kind: input, shape index: {}]   ;;  %s3689_s15 = inlined_call_operand.vmem [shape: f32[4,8], index: 15, kind: input, shape index: {}]   ;;  %s3690_s16 = inlined_call_operand.vmem [shape: f32[4,8], index: 16, kind: input, shape index: {}]   ;;  %s3691_s17 = inlined_call_operand.vmem [shape: f32[2,4,4], index: 17, kind: input, shape index: {}]   ;;  %s3692_s18 = inlined_call_operand.vmem [shape: f32[4,1], index: 18, kind: input, shape index: {}]   ;;  %s3693_s19 = inlined_call_operand.hbm [shape: f32[2,4,256], index: 19, kind: output, shape index: {0}]   ;;  %s3694_s20 = inlined_call_operand.vmem [shape: f32[2,4,2], index: 20, kind: output, shape index: {1}]  }
   0x1   :  { %3748 = sst [smem:[#allocation31_spill]] %s3674_s0 }
   0x2   :  { %3749 = sst [smem:[#allocation32_spill]] %s3675_s1 }
   0x3   :  { %3750 = sst [smem:[#allocation33_spill]] %s3676_s2 }
   0x4   :  { %3751 = sst [smem:[#allocation34_spill]] %s3677_s3 }
   0x5   :  { %3752 = sst [smem:[#allocation35_spill]] %s3678_s4 }
   0x6   :  { %3753 = sst [smem:[#allocation36_spill]] %s3679_s5 }
   0x7   :  { %3754 = sst [smem:[#allocation37_spill]] %s3680_s6 }
   0x8   :  { %3755 = sst [smem:[#allocation38_spill]] %s3681_s7 }
   0x9   :  { %3756 = sst [smem:[#allocation39_spill]] %s3682_s8 }
   0xa   :  { %3757 = sst [smem:[#allocation40_spill]] %s3685_s11 }
   0xb   :  { %26 = vsyncpa [#allocation3], 0 }
   0xc   :  { %28 = vsyncpa [#allocation3 + $0x1], 0  ;;  %s2566_s1 = smov 0   ;;  %s2568_s22 = smov 0  }
   0xd   :  { %s2570_s23 = smov 0   ;;  %s2572_s24 = smov 0  }
   0xe LB: > { %3758 = sst [smem:[#allocation5_spill]] %s2434_s23  ;;  %s2587_s2 = sadd.s32 4294967295, %s2438_s24   ;;  %s2438_s24 = sphi %s2572_s24, %s3847_s24   ;;  %s2434_s23 = sphi %s2570_s23, %s3849_s23   ;;  %s2430_s22 = sphi %s2568_s22, %s3851_s22   ;;  %s2426_s1 = sphi %s2566_s1, %s3850_s1  }
   0xf   : > { %s2207_s25 = sadd.s32 4294967294, %s2438_s24   ;;  %s2591_s3 = sadd.s32 1, %s2438_s24  }
  0x10   : > { %3759 = sst [smem:[#allocation6_spill]] %s2591_s3  ;;  %s445_s26 = sadd.s32 1, %s2434_s23 }
  0x11   : > { %s442_s27 = ssub.s32 %s2438_s24, %s2591_s3  ;;  %p455_p0 = scmp.ne.s32.totalorder %s2434_s23, %s2430_s22 }
  0x12   : > { %p443_p1 = scmp.eq.s32.totalorder %s442_s27, 0  ;;  %p456_p2 = scmp.eq.s32.totalorder %s2587_s2, 1 }
  0x13   : > { %p461_p3 = scmp.ne.s32.totalorder %s2430_s22, %s2426_s1  ;;  %p462_p4 = scmp.eq.s32.totalorder %s2207_s25, 1 }
  0x14   : > { %s2602_s28 = scalar_select %p443_p1, %s2434_s23, %s445_s26  }
  0x15   : > { %p2604_p5 = por %p456_p2, %p455_p0  ;;  %p2608_p6 = por %p462_p4, %p461_p3 }
  0x16   : > { %3760 = sst [smem:[#allocation7_spill]] %s2602_s28  ;;  %p2210_p7 = scmp.ge.s32.totalorder %s2438_s24, 1 }
  0x17   : > { %p568_p8 = scmp.lt.s32.totalorder %s2438_s24, 3 }
  0x19   : > { %p569_p9 = pnand %p2210_p7, %p568_p8 }
  0x1b   : > { %572 = sbr.rel (%p569_p9) target bundleno = 613 (0x265), region = 96 }
  0x20   : > { %s3763_s21 = sld [smem:[#allocation34_spill]]  ;;  %v3710_v1 = vmov 3   ;;  %v3705_v2 = vmov 1   ;;  %v3715_v3 = vmov 0   ;;  %v3708_v4 = vmov 2   ;;  %v1049_v17 = vld [vmem:[%s3686_s12] sm:$0xff] }
  0x21   : > { %2320 = vset.pattern.permute.xlu0 %v3710_v1  ;;  %2318 = vset.pattern.permute.xlu1 %v3705_v2  ;;  %s3764_s27 = sld [smem:[#allocation35_spill]]  ;;  %p630_p10 = scmp.lt.s32.totalorder %s2587_s2, 1  ;;  %v2668_v19 = vld [vmem:[%s3687_s13] sm:$0xff]  ;;  %vm1351_vm0 = vcmask 1043456   ;;  %v3712_v24 = vmov 4   ;;  %v3707_v26 = vmov 6   ;;  %v648_v32 = vlaneseq }
  0x22   : > { %s3765_s5 = sld [smem:[#allocation36_spill]]  ;;  %s2444_s26 = smov 17   ;;  %v3704_v27 = vmov 7   ;;  %v1197_v28 = vld [vmem:[%s3688_s14] sm:$0xff] }
  0x23   : > { %s3766_s7 = sld [smem:[#allocation38_spill]]  ;;  %s2448_s30 = smov 15   ;;  %v1354_v29 = vld [vmem:[%s3684_s10] sm:$0xf]  ;;  %v2234_v30 = vld [vmem:[%s3683_s9 + $0x24] sm:$0xf] }
  0x24   : > { %s3767_s6 = sld [smem:[#allocation37_spill]]  ;;  %v2235_v31 = vld [vmem:[%s3683_s9 + $0x4] sm:$0xf]  ;;  %v649_v33 = vshrl.u32 %v648_v32, 7  ;;  %s3703_s23 = smov 127  }
  0x25   : > { %s3768_s8 = sld [smem:[#allocation39_spill]]  ;;  %s3788_s0 = smov 127  }
  0x26   : > { %v641_v0 = vld [vmem:[%s3763_s21] sm:$0xff]  ;;  %s3769_s11 = sld [smem:[#allocation40_spill]]  ;;  %v2747_v34 = vsub.s32 0, %v649_v33  ;;  %v2749_v35 = vsub.s32 4, %v649_v33  ;;  %v2751_v36 = vsub.s32 1, %v649_v33  ;;  %v2753_v37 = vsub.s32 5, %v649_v33 }
  0x27   : > { %728 = vperm.xlu0 %2320, %v641_v0   ;;  %676 = vperm.xlu1 %2318, %v641_v0   ;;  %v640_v5 = vld [vmem:[%s3764_s27] sm:$0xff]  ;;  %s2676_s28 = scalar_select %p630_p10, %s2587_s2, 1  ;;  %v2755_v38 = vsub.s32 2, %v649_v33  ;;  %v2757_v39 = vsub.s32 6, %v649_v33  ;;  %v2763_v44 = vsub.s32 3, %v649_v33  ;;  %v2765_v45 = vsub.s32 7, %v649_v33 }
  0x28   : > { %v2215_v6 = vld [vmem:[%s3765_s5 + $0x10] sm:$0xff]  ;;  %v810_v12 = vld [vmem:[%s3765_s5] sm:$0xff]  ;;  %v2218_v14 = vld [vmem:[%s3765_s5 + $0x8] sm:$0xff]  ;;  %s3770_s3 = sld [smem:[#allocation31_spill]]  ;;  %s2446_s27 = smov 16   ;;  %3772 = vst [vmem:[#allocation9_spill] sm:$0xff] %v2749_v35 }
  0x29   : > { %v2216_v7 = vld [vmem:[%s3766_s7 + $0x10] sm:$0xff]  ;;  %v841_v9 = vld [vmem:[%s3766_s7] sm:$0xff]  ;;  %v2220_v11 = vld [vmem:[%s3766_s7 + $0x8] sm:$0xff]  ;;  %3773 = vst [vmem:[#allocation10_spill] sm:$0xff] %v2753_v37  ;;  %s3700_s21 = smov 112  }
  0x2a   : > { %v762_v8 = vld [vmem:[%s3767_s6] sm:$0xff]  ;;  %v2224_v13 = vld [vmem:[%s3766_s7 + $0x18] sm:$0xff]  ;;  %s2257_s6 = sshll.u32 %s2676_s28, 3  ;;  %3774 = vst [vmem:[#allocation11_spill] sm:$0xff] %v2757_v39 }
  0x2b   : > { %2321 = vset.pattern.permute.xlu0 %v3715_v3  ;;  %2319 = vset.pattern.permute.xlu1 %v3708_v4  ;;  %v779_v10 = vld [vmem:[%s3768_s8] sm:$0xff]  ;;  %v2222_v16 = vld [vmem:[%s3765_s5 + $0x18] sm:$0xff] }
  0x2c   : > { %644 = vperm.xlu0 %2321, %v641_v0   ;;  %702 = vperm.xlu1 %2319, %v641_v0   ;;  %v2228_v15 = vld [vmem:[%s3766_s7 + $0x20] sm:$0xff] }
  0x2d   : > { %v2226_v18 = vld [vmem:[%s3765_s5 + $0x20] sm:$0xff]  ;;  %s2450_s5 = smov 32  }
  0x2e   : > { %v2673_v20 = vld [vmem:[%s3769_s11] sm:$0xff]  ;;  %s2688_s25 = scalar_lea.vmem %s3770_s3, %s2257_s6  ;;  %s2456_s3 = smov 126  }
  0x2f   : > { %v2691_v21 = vld [vmem:[%s2688_s25] sm:$0xff]  ;;  %s3777_s6 = smov 112  }
  0x30   : > { %2322 = vset.pattern.permute.xlu1 %v3715_v3  ;;  %670 = vperm.xlu0 %2321, %v640_v5   ;;  %v2697_v22 = vsel %vm1351_vm0, %v2691_v21, 0.0  ;;  %v2702_v23 = vcombine.high %v2691_v21, %v2691_v21  ;;  %v651_v42 = vrot.slane %v2691_v21, %v2747_v34  ;;  %v655_v43 = vrot.slane %v2691_v21, %v2749_v35 }
  0x31   : > { %757 = vperm.xlu1 %2322, %v2215_v6   ;;  %v682_v46 = vrot.slane %v2691_v21, %v2751_v36  ;;  %v686_v47 = vrot.slane %v2691_v21, %v2753_v37  ;;  %v708_v48 = vrot.slane %v2691_v21, %v2755_v38  ;;  %v712_v49 = vrot.slane %v2691_v21, %v2757_v39 }
  0x32   : > { %3771 = vst [vmem:[#allocation8_spill] sm:$0xff] %v2702_v23  ;;  %v2709_v25 = vsel %vm1351_vm0, %v2702_v23, 0.0  ;;  %v661_v50 = vrot.slane %v651_v42, %v2747_v34  ;;  %v665_v51 = vrot.slane %v655_v43, %v2747_v34  ;;  %v734_v52 = vrot.slane %v2691_v21, %v2763_v44 }
  0x33   : > { %v738_v53 = vrot.slane %v2691_v21, %v2765_v45  ;;  %v692_v54 = vrot.slane %v682_v46, %v2751_v36  ;;  %v696_v55 = vrot.slane %v686_v47, %v2751_v36  ;;  %v718_v58 = vrot.slane %v708_v48, %v2755_v38  ;;  %v2842_v48 = vld [vmem:[%s3689_s15] sm:$0xf] }
  0x34   : > { %774 = vperm.xlu0 %2321, %v2216_v7   ;;  %v722_v59 = vrot.slane %v712_v49, %v2755_v38  ;;  %v744_v62 = vrot.slane %v734_v52, %v2763_v44  ;;  %v2237_v49 = vld [vmem:[%s3683_s9 + $0x8] sm:$0xf]  ;;  %v1680_v52 = vld [vmem:[%s3692_s18] sm:$0xf] }
  0x35   : > { %765 = vperm.xlu1 %2322, %v762_v8   ;;  %v748_v63 = vrot.slane %v738_v53, %v2763_v44 }
  0x38   : > { %844 = vperm.xlu0 %2321, %v841_v9  }
  0x39   : > { %782 = vperm.xlu1 %2322, %v779_v10  }
  0x3c   : > { %910 = vperm.xlu0 %2321, %v2220_v11  }
  0x3d   : > { %813 = vperm.xlu1 %2322, %v810_v12  }
  0x40   : > { %976 = vperm.xlu0 %2321, %v2224_v13  }
  0x41   : > { %877 = vperm.xlu1 %2322, %v2218_v14  }
  0x44   : > { %1042 = vperm.xlu0 %2321, %v2228_v15  }
  0x45   : > { %943 = vperm.xlu1 %2322, %v2222_v16  }
  0x48   : > { %1068 = vperm.xlu0 %2321, %v1049_v17  }
  0x49   : > { %1009 = vperm.xlu1 %2322, %v2226_v18  }
  0x4c   : > { %1201 = vperm.xlu0 %2321, %v2668_v19  }
  0x4d   : > { %1053 = vperm.xlu1 %2322, %v2673_v20  }
  0x50   : > { %2328 = vset.pattern.permute.xlu0 %v3708_v4 }
  0x51   : > { %2323 = vset.pattern.permute.xlu1 %v3705_v2  ;;  %1090 = vperm.xlu0 %2328, %v2673_v20  }
  0x52   : > { %1074 = vperm.xlu1 %2323, %v2673_v20  }
  0x55   : > { %1238 = vperm.xlu0 %2328, %v2668_v19  }
  0x56   : > { %2324 = vset.pattern.permute.xlu1 %v3710_v1 }
  0x57   : > { %1106 = vperm.xlu1 %2324, %v2673_v20  }
  0x59   : > { %1358 = vrot.lane.b32.xlu0 %v2697_v22, %s2444_s26 }
  0x5b   : > { %2325 = vset.pattern.permute.xlu1 %v3712_v24 }
  0x5c   : > { %1122 = vperm.xlu1 %2325, %v2673_v20  }
  0x5d   : > { %1411 = vrot.lane.b32.xlu0 %v2709_v25, %s2446_s27 }
  0x60   : > { %2326 = vset.pattern.permute.xlu1 %v3707_v26 }
  0x61   : > { %1154 = vperm.xlu1 %2326, %v2673_v20   ;;  %1442 = vrot.lane.b32.xlu0 %v2709_v25, %s2448_s30 }
  0x65   : > { %2327 = vset.pattern.permute.xlu1 %v3704_v27 }
  0x66   : > { %1170 = vperm.xlu1 %2327, %v2673_v20  }
  0x6a   : > { %2329 = vset.pattern.permute.xlu1 %v3715_v3 }
  0x6b   : > { %1216 = vperm.xlu1 %2329, %v1197_v28  }
  0x6f   : > { %2330 = vset.pattern.permute.xlu1 %v3705_v2 }
  0x70   : > { %1222 = vperm.xlu1 %2330, %v2668_v19  }
  0x74   : > { %2331 = vset.pattern.permute.xlu1 %v3710_v1 }
  0x75   : > { %1254 = vperm.xlu1 %2331, %v2668_v19  }
  0x79   : > { %2332 = vset.pattern.permute.xlu1 %v3712_v24 }
  0x7a   : > { %1270 = vperm.xlu1 %2332, %v2668_v19  }
  0x7e   : > { %2333 = vset.pattern.permute.xlu1 %v3707_v26 }
  0x7f   : > { %1302 = vperm.xlu1 %2333, %v2668_v19  }
  0x83   : > { %2334 = vset.pattern.permute.xlu1 %v3704_v27 }
  0x84   : > { %1318 = vperm.xlu1 %2334, %v2668_v19  }
  0x88   : > { %1360 = vrot.lane.b32.xlu1 %v2709_v25, %s2444_s26  ;;  %s2451_s26 = smov 2  }
  0x89   : > { %2335 = vset.pattern.permute.xlu1 %v3715_v3 }
  0x8c   : > { %1388 = vperm.xlu1 %2335, %v1354_v29  }
  0x90   : > { %1397 = vperm.xlu1 %2335, %v2234_v30  }
  0x94   : > { %1409 = vrot.lane.b32.xlu1 %v2697_v22, %s2446_s27 }
  0x98   : > { %1421 = vperm.xlu1 %2335, %v2235_v31  }
  0x9c   : > { %1440 = vrot.lane.b32.xlu1 %v2697_v22, %s2448_s30  ;;  %s2452_s30 = smov 1  }
  0xa2   : > { %v729_v40 = vpop.permute.xlu0 %728  ;;  %v677_v41 = vpop.permute.xlu1 %676 }
  0xa3   : > { %v697_v0 = vmul.f32 %v692_v54, %v677_v41  ;;  %v698_v5 = vmul.f32 %v696_v55, %v677_v41  ;;  %v749_v14 = vmul.f32 %v744_v62, %v729_v40  ;;  %v750_v15 = vmul.f32 %v748_v63, %v729_v40  ;;  %v2865_v55 = vld [vmem:[%s3690_s16] sm:$0xf] }
  0xa7   : > { %v645_v56 = vpop.permute.xlu0 %644  ;;  %v703_v57 = vpop.permute.xlu1 %702 }
  0xa8   : > { %v666_v60 = vmul.f32 %v661_v50, %v645_v56  ;;  %v667_v61 = vmul.f32 %v665_v51, %v645_v56  ;;  %v723_v7 = vmul.f32 %v718_v58, %v703_v57  ;;  %v724_v8 = vmul.f32 %v722_v59, %v703_v57 }
  0xa9   : > { %v2457_v58 = vmov 5  }
  0xab   : > { %v671_v6 = vpop.permute.xlu0 %670 }
  0xac   : > { %v673_v9 = vadd.f32 %v671_v6, %v666_v60  ;;  %v674_v10 = vadd.f32 %v671_v6, %v667_v61  ;;  %v2787_v11 = vpop.permute.xlu1 %757 }
  0xae   : > { %v699_v12 = vadd.f32 %v697_v0, %v673_v9  ;;  %v700_v13 = vadd.f32 %v698_v5, %v674_v10  ;;  %v2241_v9 = vld [vmem:[%s3683_s9 + $0x10] sm:$0xf]  ;;  %v2926_v10 = vand.u32 127, %v648_v32  ;;  %v2243_v32 = vld [vmem:[%s3683_s9 + $0x14] sm:$0xf] }
  0xaf   : > { %v775_v29 = vpop.permute.xlu0 %774 }
  0xb0   : > { %v725_v16 = vadd.f32 %v723_v7, %v699_v12  ;;  %v726_v17 = vadd.f32 %v724_v8, %v700_v13  ;;  %v2789_v18 = vpop.permute.xlu1 %765  ;;  %v1378_v7 = vld [vmem:[%s3683_s9] sm:$0xf]  ;;  %vm1362_vm1 = vcmp.lt.s32.totalorder %v2926_v10, 17  ;;  %vm857_vm2 = vcmp.lt.s32.totalorder %v2926_v10, 16 }
  0xb1   : > { %vm1444_vm3 = vcmp.lt.s32.totalorder %v2926_v10, 15  ;;  %vm825_vm4 = vcmp.lt.s32.totalorder %v2926_v10, 2  ;;  %vm794_vm5 = vcmp.lt.s32.totalorder %v2926_v10, 32  ;;  %vm890_vm6 = vcmp.lt.s32.totalorder %v2926_v10, 1 }
  0xb2   : > { %v2791_v21 = vadd.f32 %v749_v14, %v725_v16  ;;  %v2793_v28 = vadd.f32 %v750_v15, %v726_v17  ;;  %v2233_v14 = vld [vmem:[%s3684_s10 + $0x4] sm:$0xf]  ;;  %vm923_vm7 = vcmp.lt.s32.totalorder %v2926_v10, 112  ;;  %vm956_vm8 = vcmp.lt.s32.totalorder %v2926_v10, 127 }
  0xb3   : > { %v2849_v51 = vpop.permute.xlu0 %844  ;;  %vm989_vm9 = vcmp.lt.s32.totalorder %v2926_v10, 96  ;;  %vm1022_vm10 = vcmp.lt.s32.totalorder %v2926_v10, 126  ;;  %vm1569_vm11 = vcmp.lt.s32.totalorder %v2926_v10, 113  ;;  %vm1642_vm12 = vcmp.lt.s32.totalorder %v2926_v10, 111 }
  0xb4   : > { %v2796_v30 = vmul.f32 %v775_v29, %v2791_v21  ;;  %v2799_v31 = vmul.f32 %v775_v29, %v2793_v28  ;;  %v2801_v33 = vpop.permute.xlu1 %782  ;;  %790 = vrot.lane.b32.xlu0 %v2793_v28, %s2450_s5  ;;  %788 = vrot.lane.b32.xlu1 %v2791_v21, %s2450_s5  ;;  %s3782_s5 = sld [smem:[#allocation33_spill]]  ;;  %v2236_v29 = vld [vmem:[%s3683_s9 + $0x28] sm:$0xf] }
  0xb7   : > { %v2859_v54 = vpop.permute.xlu0 %910 }
  0xb8   : > { %v2805_v40 = vpop.permute.xlu1 %813  ;;  %821 = vrot.lane.b32.xlu0 %v2791_v21, %s2451_s26  ;;  %823 = vrot.lane.b32.xlu1 %v2793_v28, %s2451_s26  ;;  %s2258_s26 = sshll.u32 %s2587_s2, 7 }
  0xba   : > { %v2936_v13 = vld [vmem:[%s3782_s5 + $0x2] sm:$0x3] }
  0xbb   : > { %v2872_v57 = vpop.permute.xlu0 %976  ;;  %3783 = vst [vmem:[#allocation16_spill] sm:$0xff] %v2936_v13 }
  0xbc   : > { %v2809_v41 = vpop.permute.xlu1 %877  ;;  %855 = vrot.lane.b32.xlu0 %v2793_v28, %s2446_s27  ;;  %853 = vrot.lane.b32.xlu1 %v2791_v21, %s2446_s27  ;;  %s2455_s27 = smov 96  }
  0xbf   : > { %v2879_v60 = vpop.permute.xlu0 %1042 }
  0xc0   : > { %v2815_v42 = vpop.permute.xlu1 %943  ;;  %886 = vrot.lane.b32.xlu0 %v2791_v21, %s2452_s30  ;;  %888 = vrot.lane.b32.xlu1 %v2793_v28, %s2452_s30 }
  0xc3   : > { %v2887_v62 = vpop.permute.xlu0 %1068 }
  0xc4   : > { %v2821_v43 = vpop.permute.xlu1 %1009  ;;  %921 = vrot.lane.b32.xlu0 %v2793_v28, %s3700_s21  ;;  %919 = vrot.lane.b32.xlu1 %v2791_v21, %s3700_s21  ;;  %s3702_s21 = smov 113  }
  0xc7   : > { %v2897_v63 = vpop.permute.xlu0 %1201 }
  0xc8   : > { %952 = vrot.lane.b32.xlu0 %v2791_v21, %s3703_s23  ;;  %v2829_v46 = vpop.permute.xlu1 %1053  ;;  %954 = vrot.lane.b32.xlu1 %v2793_v28, %s3703_s23 }
  0xcc   : > { %987 = vrot.lane.b32.xlu0 %v2793_v28, %s2455_s27  ;;  %985 = vrot.lane.b32.xlu1 %v2791_v21, %s2455_s27  ;;  %v2907_v5 = vpop.permute.xlu0 %1090  ;;  %s2459_s27 = smov 111  }
  0xcd   : > { %v2835_v47 = vpop.permute.xlu1 %1074 }
  0xd0   : > { %1018 = vrot.lane.b32.xlu0 %v2791_v21, %s2456_s3  ;;  %1020 = vrot.lane.b32.xlu1 %v2793_v28, %s2456_s3  ;;  %v2919_v8 = vpop.permute.xlu0 %1238 }
  0xd2   : > { %v2847_v50 = vpop.permute.xlu1 %1106 }
  0xd4   : > { %1723 = vperm.xlu0 %2328, %v2842_v48   ;;  %1464 = vperm.xlu1 %2335, %v2237_v49   ;;  %v1359_v17 = vpop.permute.xlu0 %1358 }
  0xd7   : > { %v2855_v53 = vpop.permute.xlu1 %1122 }
  0xd8   : > { %1484 = vrot.lane.b32.xlu0 %v2709_v25, %s2452_s30  ;;  %1683 = vperm.xlu1 %2335, %v1680_v52  }
  0xd9   : > { %2342 = vset.pattern.permute.xlu0 %v3705_v2 }
  0xdc   : > { %1837 = vperm.xlu0 %2342, %v2865_v55   ;;  %v2868_v56 = vpop.permute.xlu1 %1154  ;;  %2336 = vset.pattern.permute.xlu1 %v3705_v2 }
  0xdd   : > { %3775 = vst [vmem:[#allocation12_spill] sm:$0xff] %v2868_v56  ;;  %1707 = vperm.xlu1 %2336, %v2842_v48   ;;  %v3801_v56 = vmov 0  }
  0xe0   : > { %2343 = vset.pattern.permute.xlu0 %v2457_v58 }
  0xe1   : > { %1138 = vperm.xlu0 %2343, %v2673_v20   ;;  %v2875_v59 = vpop.permute.xlu1 %1170  ;;  %2337 = vset.pattern.permute.xlu1 %v3710_v1 }
  0xe2   : > { %3776 = vst [vmem:[#allocation13_spill] sm:$0xff] %v2875_v59  ;;  %1739 = vperm.xlu1 %2337, %v2842_v48  }
  0xe5   : > { %1286 = vperm.xlu0 %2343, %v2668_v19  }
  0xe6   : > { %v2882_v61 = vpop.permute.xlu1 %1216  ;;  %2338 = vset.pattern.permute.xlu1 %v3712_v24 }
  0xe7   : > { %1755 = vperm.xlu1 %2338, %v2842_v48  }
  0xe9   : > { %1771 = vperm.xlu0 %2343, %v2842_v48  }
  0xeb   : > { %v2889_v20 = vpop.permute.xlu1 %1222  ;;  %2339 = vset.pattern.permute.xlu1 %v3707_v26 }
  0xec   : > { %1787 = vperm.xlu1 %2339, %v2842_v48  }
  0xed   : > { %1534 = vrot.lane.b32.xlu0 %v2697_v22, %s3703_s23  ;;  %s3780_s23 = sld [smem:[#allocation32_spill]] }
  0xf0   : > { %v2895_v19 = vpop.permute.xlu1 %1254  ;;  %2340 = vset.pattern.permute.xlu1 %v3704_v27  ;;  %v2238_v27 = vld [vmem:[%s3683_s9 + $0x2c] sm:$0xf] }
  0xf1   : > { %1565 = vrot.lane.b32.xlu0 %v2697_v22, %s3702_s21  ;;  %1803 = vperm.xlu1 %2340, %v2842_v48  }
  0xf3   : > { %s3781_s7 = smov %s3780_s23  ;;  %v2931_v12 = vld [vmem:[%s3780_s23 + $0x2] sm:$0x3]  ;;  %s2119_s23 = scalar_lea.hbm %s3693_s19, %s2258_s26 }
  0xf4   : > { %v1357_v16 = vmul.f32 %v2936_v13, %v2931_v12 }
  0xf5   : > { %1609 = vrot.lane.b32.xlu0 %v2709_v25, %s3777_s6  ;;  %v2905_v0 = vpop.permute.xlu1 %1270  ;;  %2341 = vset.pattern.permute.xlu1 %v3715_v3 }
  0xf6   : > { %3778 = vst [vmem:[#allocation14_spill] sm:$0xff] %v2905_v0  ;;  %1821 = vperm.xlu1 %2341, %v2865_v55   ;;  %v1369_v52 = vrot.slane %v1357_v16, %v2747_v34  ;;  %v1373_v58 = vrot.slane %v1357_v16, %v2751_v36 }
  0xf9   : > { %1901 = vperm.xlu0 %2343, %v2865_v55  }
  0xfa   : > { %v2912_v6 = vpop.permute.xlu1 %1302  ;;  %1482 = vrot.lane.b32.xlu1 %v2697_v22, %s2452_s30 }
  0xfb   : > { %3779 = vst [vmem:[#allocation15_spill] sm:$0xff] %v2912_v6 }
  0xfd   : > { %2349 = vset.pattern.permute.xlu0 %v3715_v3 }
  0xfe   : > { %1381 = vperm.xlu0 %2349, %v1378_v7   ;;  %1516 = vperm.xlu1 %2341, %v2241_v9  }
  0xff   : > { %v2941_v15 = vpop.permute.xlu1 %1318 }
 0x100   : > { %3784 = vst [vmem:[#allocation17_spill] sm:$0xff] %v2941_v15 }
 0x102   : > { %1404 = vperm.xlu0 %2349, %v2233_v14   ;;  %1546 = vperm.xlu1 %2341, %v2243_v32  }
 0x103   : > { %v1361_v49 = vpop.permute.xlu1 %1360 }
 0x104   : > { %v1363_v7 = vsel %vm1362_vm1, %v1359_v17, %v1361_v49  ;;  %v1364_v9 = vsel %vm1362_vm1, %v1361_v49, %v1359_v17  ;;  %v1412_v49 = vpop.permute.xlu0 %1411 }
 0x105   : > { %v2961_v32 = vmul.f32 %v1369_v52, %v1364_v9  ;;  %v2963_v2 = vmul.f32 %v1373_v58, %v1363_v7 }
 0x106   : > { %1432 = vperm.xlu0 %2349, %v2236_v29   ;;  %2344 = vset.pattern.permute.xlu1 %v3708_v4  ;;  %v2977_v29 = vrot.slane %v2931_v12, %v2747_v34 }
 0x107   : > { %v2958_v14 = vpop.permute.xlu1 %1388  ;;  %1853 = vperm.xlu1 %2344, %v2865_v55   ;;  %3786 = vst [vmem:[#allocation19_spill] sm:$0xff] %v2961_v32  ;;  %3787 = vst [vmem:[#allocation20_spill] sm:$0xff] %v2963_v2 }
 0x108   : > { %3785 = vst [vmem:[#allocation18_spill] sm:$0xff] %v2958_v14  ;;  %v3798_v14 = vmov 1  }
 0x10a   : > { %1475 = vperm.xlu0 %2349, %v2238_v27   ;;  %v2981_v27 = vrot.slane %v2931_v12, %v2751_v36 }
 0x10b   : > { %v1398_v26 = vpop.permute.xlu1 %1397  ;;  %1536 = vrot.lane.b32.xlu1 %v2709_v25, %s3788_s0  ;;  %s3795_s0 = smov 113  }
 0x10c   : > { %v2968_v16 = vmul.f32 %v1398_v26, %v2961_v32  ;;  %v2971_v17 = vmul.f32 %v1398_v26, %v2963_v2  ;;  %2345 = vset.pattern.permute.xlu1 %v3710_v1  ;;  %v2239_v26 = vld [vmem:[%s3683_s9 + $0xc] sm:$0xf]  ;;  %v2245_v1 = vld [vmem:[%s3683_s9 + $0x18] sm:$0xf] }
 0x10e   : > { %3789 = vst [vmem:[#allocation21_spill] sm:$0xff] %v2968_v16  ;;  %3790 = vst [vmem:[#allocation22_spill] sm:$0xff] %v2971_v17  ;;  %1691 = vperm.xlu0 %2349, %v2842_v48   ;;  %v2240_v48 = vld [vmem:[%s3683_s9 + $0x30] sm:$0xf] }
 0x10f   : > { %v1410_v52 = vpop.permute.xlu1 %1409  ;;  %1869 = vperm.xlu1 %2345, %v2865_v55  }
 0x110   : > { %v1413_v58 = vsel %vm857_vm2, %v1410_v52, %v1412_v49  ;;  %v1414_v7 = vsel %vm857_vm2, %v1412_v49, %v1410_v52 }
 0x111   : > { %v2993_v9 = vmul.f32 %v1414_v7, %v2977_v29  ;;  %v2996_v4 = vmul.f32 %v1413_v58, %v2981_v27  ;;  %v1443_v58 = vpop.permute.xlu0 %1442 }
 0x112   : > { %1494 = vperm.xlu0 %2349, %v2239_v26   ;;  %v2247_v26 = vld [vmem:[%s3683_s9 + $0x1c] sm:$0xf] }
 0x113   : > { %3791 = vst [vmem:[#allocation23_spill] sm:$0xff] %v2993_v9  ;;  %3792 = vst [vmem:[#allocation24_spill] sm:$0xff] %v2996_v4  ;;  %v1422_v24 = vpop.permute.xlu1 %1421  ;;  %2346 = vset.pattern.permute.xlu1 %v3715_v3 }
 0x114   : > { %v3006_v49 = vmul.f32 %v1422_v24, %v2993_v9  ;;  %v3009_v52 = vmul.f32 %v1422_v24, %v2996_v4  ;;  %1505 = vperm.xlu1 %2346, %v2240_v48   ;;  %v3796_v24 = vmov 4   ;;  %v2242_v48 = vld [vmem:[%s3683_s9 + $0x34] sm:$0xf] }
 0x116   : > { %3793 = vst [vmem:[#allocation25_spill] sm:$0xff] %v3006_v49  ;;  %3794 = vst [vmem:[#allocation26_spill] sm:$0xff] %v3009_v52  ;;  %1589 = vperm.xlu0 %2349, %v2245_v1   ;;  %v2249_v1 = vld [vmem:[%s3683_s9 + $0x20] sm:$0xf]  ;;  %v3797_v49 = vmov 6  }
 0x117   : > { %v1441_v7 = vpop.permute.xlu1 %1440 }
 0x118   : > { %v3015_v23 = vsel %vm1444_vm3, %v1441_v7, %v1443_v58  ;;  %v3017_v17 = vsel %vm1444_vm3, %v1443_v58, %v1441_v7  ;;  %1567 = vrot.lane.b32.xlu1 %v2709_v25, %s3795_s0  ;;  %v2246_v58 = vld [vmem:[%s3683_s9 + $0x3c] sm:$0xf]  ;;  %v2244_v7 = vld [vmem:[%s3683_s9 + $0x38] sm:$0xf]  ;;  %s2460_s0 = smov [#allocation2]  }
 0x119   : > { %2347 = vset.pattern.permute.xlu1 %v3796_v24 }
 0x11a   : > { %1619 = vperm.xlu0 %2349, %v2247_v26  }
 0x11c   : > { %1885 = vperm.xlu1 %2347, %v2865_v55  }
 0x11e   : > { %1527 = vperm.xlu0 %2349, %v2242_v48   ;;  %v820_v48 = vld [vmem:[%s3782_s5] sm:$0x3] }
 0x120   : > { %1607 = vrot.lane.b32.xlu1 %v2697_v22, %s3777_s6 }
 0x121   : > { %2348 = vset.pattern.permute.xlu1 %v3715_v3  ;;  %v836_v3 = vrot.slane %v820_v48, %v2751_v36 }
 0x122   : > { %1640 = vrot.lane.b32.xlu0 %v2709_v25, %s2459_s27  ;;  %v3042_v25 = vld [vmem:[%s3691_s17] sm:$0xf] }
 0x124   : > { %1662 = vperm.xlu1 %2348, %v2249_v1  }
 0x126   : > { %v791_v26 = vpop.permute.xlu0 %790  ;;  %1600 = vperm.xlu0 %2349, %v2246_v58   ;;  %v789_v24 = vpop.permute.xlu1 %788  ;;  %v832_v58 = vrot.slane %v820_v48, %v2747_v34 }
 0x127   : > { %v796_v6 = vsel %vm794_vm5, %v791_v26, %v789_v24 }
 0x128   : > { %1557 = vperm.xlu1 %2348, %v2244_v7   ;;  %v787_v7 = vld [vmem:[%s3781_s7] sm:$0x3] }
 0x129   : > { %v805_v48 = vrot.slane %v787_v7, %v2751_v36 }
 0x12a   : > { %1951 = vperm.xlu0 %2349, %v3042_v25   ;;  %v822_v1 = vpop.permute.xlu0 %821  ;;  %v824_v4 = vpop.permute.xlu1 %823 }
 0x12b   : > { %v826_v9 = vsel %vm825_vm4, %v822_v1, %v824_v4  ;;  %v827_v16 = vsel %vm825_vm4, %v824_v4, %v822_v1  ;;  %v3063_v4 = vrot.slane %v2936_v13, %v2747_v34 }
 0x12c   : > { %1638 = vrot.lane.b32.xlu1 %v2697_v22, %s2459_s27  ;;  %v839_v2 = vmul.f32 %v832_v58, %v827_v16  ;;  %v840_v32 = vmul.f32 %v836_v3, %v826_v9  ;;  %v3067_v22 = vrot.slane %v2936_v13, %v2751_v36  ;;  %v3072_v3 = vld [vmem:[%s3691_s17 + $0x4] sm:$0xf]  ;;  %v760_v16 = vmul.f32 %v2787_v11, %v2791_v21 }
 0x12d   : > { %2350 = vset.pattern.permute.xlu1 %v3797_v49  ;;  %3799 = vst [vmem:[#allocation27_spill] sm:$0xff] %v3063_v4  ;;  %v761_v9 = vmul.f32 %v2787_v11, %v2793_v28  ;;  %v801_v49 = vrot.slane %v787_v7, %v2747_v34  ;;  %v3083_v58 = vld [vmem:[%s3781_s7 + $0x6] sm:$0x3]  ;;  %v795_v13 = vsel %vm794_vm5, %v789_v24, %v791_v26 }
 0x12e   : > { %v856_v52 = vpop.permute.xlu0 %855  ;;  %2353 = vset.pattern.permute.xlu0 %v3798_v14  ;;  %v854_v15 = vpop.permute.xlu1 %853  ;;  %3800 = vst [vmem:[#allocation28_spill] sm:$0xff] %v3067_v22  ;;  %v847_v0 = vmul.f32 %v2849_v51, %v839_v2  ;;  %v848_v59 = vmul.f32 %v2849_v51, %v840_v32  ;;  %v785_v11 = vadd.f32 %v2801_v33, %v2796_v30  ;;  %v3802_v32 = vmov 7  }
 0x12f   : > { %1967 = vperm.xlu0 %2353, %v3042_v25   ;;  %v786_v28 = vadd.f32 %v2801_v33, %v2799_v31  ;;  %v3103_v30 = vrot.slane %v3083_v58, %v2747_v34  ;;  %v808_v31 = vmul.f32 %v801_v49, %v796_v6  ;;  %v809_v33 = vmul.f32 %v805_v48, %v795_v13 }
 0x130   : > { %1917 = vperm.xlu1 %2350, %v2865_v55   ;;  %v858_v26 = vsel %vm857_vm2, %v854_v15, %v856_v52  ;;  %v859_v24 = vsel %vm857_vm2, %v856_v52, %v854_v15  ;;  %v3119_v49 = vrot.slane %v3083_v58, %v2751_v36 }
 0x131   : > { %3803 = vst [vmem:[#allocation29_spill] sm:$0xff] %v3103_v30 }
 0x132   : > { %v887_v1 = vpop.permute.xlu0 %886  ;;  %v889_v21 = vpop.permute.xlu1 %888  ;;  %3804 = vst [vmem:[#allocation30_spill] sm:$0xff] %v3119_v49 }
 0x133   : > { %2356 = vset.pattern.permute.xlu0 %v3801_v56  ;;  %v891_v7 = vsel %vm890_vm6, %v887_v1, %v889_v21  ;;  %v892_v37 = vsel %vm890_vm6, %v889_v21, %v887_v1  ;;  %v3113_v1 = vld [vmem:[%s3782_s5 + $0x6] sm:$0x3]  ;;  %v849_v21 = vadd.f32 %v847_v0, %v785_v11  ;;  %v3805_v0 = vmov 3  }
 0x134   : > { %2018 = vperm.xlu0 %2356, %v3072_v3   ;;  %v904_v2 = vmul.f32 %v3063_v4, %v892_v37  ;;  %v905_v51 = vmul.f32 %v3067_v22, %v891_v7  ;;  %2351 = vset.pattern.permute.xlu1 %v3802_v32  ;;  %v850_v7 = vadd.f32 %v848_v59, %v786_v28 }
 0x135   : > { %1933 = vperm.xlu1 %2351, %v2865_v55   ;;  %v2248_v55 = vld [vmem:[%s3683_s9 + $0x40] sm:$0xf]  ;;  %v3127_v15 = vrot.slane %v3113_v1, %v2747_v34  ;;  %v3131_v59 = vrot.slane %v3113_v1, %v2751_v36  ;;  %v871_v22 = vmul.f32 %v2977_v29, %v859_v24  ;;  %v872_v4 = vmul.f32 %v2981_v27, %v858_v26 }
 0x136   : > { %v922_v37 = vpop.permute.xlu0 %921  ;;  %v913_v32 = vmul.f32 %v2859_v54, %v904_v2  ;;  %v914_v6 = vmul.f32 %v2859_v54, %v905_v51  ;;  %v920_v13 = vpop.permute.xlu1 %919  ;;  %v2225_v54 = vld [vmem:[%s3781_s7 + $0x8] sm:$0x3]  ;;  %v768_v2 = vadd.f32 %v2789_v18, %v760_v16  ;;  %v769_v51 = vadd.f32 %v2789_v18, %v761_v9  ;;  %v2250_v16 = vld [vmem:[%s3683_s9 + $0x44] sm:$0xf] }
 0x137   : > { %v924_v11 = vsel %vm923_vm7, %v920_v13, %v922_v37  ;;  %v925_v28 = vsel %vm923_vm7, %v922_v37, %v920_v13  ;;  %v996_v37 = vrot.slane %v2225_v54, %v2747_v34  ;;  %v2227_v18 = vld [vmem:[%s3782_s5 + $0x8] sm:$0x3]  ;;  %v880_v26 = vmul.f32 %v2809_v41, %v871_v22  ;;  %s2382_s5 = sshll.u32 %s2460_s0, 4  ;;  %s2383_s5 = int_to_ptr.vmem [resolvable:$false] %s2382_s5 }
 0x138   : > { %2359 = vset.pattern.permute.xlu0 %v3805_v0  ;;  %v915_v52 = vadd.f32 %v913_v32, %v849_v21  ;;  %v916_v48 = vadd.f32 %v914_v6, %v850_v7  ;;  %v816_v7 = vmul.f32 %v2805_v40, %v808_v31  ;;  %v817_v32 = vmul.f32 %v2805_v40, %v809_v33  ;;  %s2384_s7 = scalar_lea.vmem %s2383_s5, 256 }
 0x139   : > { %2066 = vperm.xlu0 %2359, %v3072_v3   ;;  %2352 = vset.pattern.permute.xlu1 %v3801_v56  ;;  %v937_v29 = vmul.f32 %v3103_v30, %v924_v11  ;;  %v938_v27 = vmul.f32 %v3119_v49, %v925_v28  ;;  %v1000_v33 = vrot.slane %v2225_v54, %v2751_v36 }
 0x13a   : > { %v953_v21 = vpop.permute.xlu0 %952  ;;  %1630 = vperm.xlu1 %2352, %v2248_v55   ;;  %v955_v6 = vpop.permute.xlu1 %954  ;;  %v881_v24 = vmul.f32 %v2809_v41, %v872_v4  ;;  %v1029_v55 = vrot.slane %v2227_v18, %v2747_v34  ;;  %v1033_v11 = vrot.slane %v2227_v18, %v2751_v36  ;;  %v818_v28 = vadd.f32 %v816_v7, %v768_v2 }
 0x13b   : > { %v957_v56 = vsel %vm956_vm8, %v953_v21, %v955_v6  ;;  %v958_v40 = vsel %vm956_vm8, %v955_v6, %v953_v21  ;;  %v819_v21 = vadd.f32 %v817_v32, %v769_v51  ;;  %v946_v54 = vmul.f32 %v2815_v42, %v937_v29 }
 0x13c   : > { %v970_v9 = vmul.f32 %v3127_v15, %v957_v56  ;;  %v971_v31 = vmul.f32 %v3131_v59, %v958_v40  ;;  %v947_v49 = vmul.f32 %v2815_v42, %v938_v27  ;;  %v1439_v7 = vmul.f32 %v3113_v1, %v2931_v12 }
 0x13d   : > { %v883_v32 = vadd.f32 %v881_v24, %v819_v21  ;;  %v3806_v27 = vmov 2  }
 0x13e   : > { %v988_v13 = vpop.permute.xlu0 %987  ;;  %v979_v6 = vmul.f32 %v2872_v57, %v970_v9  ;;  %v980_v56 = vmul.f32 %v2872_v57, %v971_v31  ;;  %1673 = vperm.xlu1 %2352, %v2250_v16   ;;  %v986_v40 = vpop.permute.xlu1 %985  ;;  %v882_v57 = vadd.f32 %v880_v26, %v818_v28  ;;  %v1455_v26 = vrot.slane %v1439_v7, %v2751_v36 }
 0x13f   : > { %v990_v41 = vsel %vm989_vm9, %v986_v40, %v988_v13  ;;  %v991_v4 = vsel %vm989_vm9, %v988_v13, %v986_v40  ;;  %v949_v30 = vadd.f32 %v947_v49, %v883_v32 }
 0x140   : > { %v981_v22 = vadd.f32 %v979_v6, %v915_v52  ;;  %v982_v18 = vadd.f32 %v980_v56, %v916_v48  ;;  %v1003_v2 = vmul.f32 %v996_v37, %v990_v41  ;;  %v1004_v51 = vmul.f32 %v1000_v33, %v991_v4 }
 0x141   : > { %v948_v31 = vadd.f32 %v946_v54, %v882_v57  ;;  %v1451_v33 = vrot.slane %v1439_v7, %v2747_v34 }
 0x142   : > { %v1019_v16 = vpop.permute.xlu0 %1018  ;;  %v1012_v29 = vmul.f32 %v2821_v43, %v1003_v2  ;;  %v1013_v42 = vmul.f32 %v2821_v43, %v1004_v51  ;;  %2354 = vset.pattern.permute.xlu1 %v3806_v27  ;;  %v1021_v9 = vpop.permute.xlu1 %1020 }
 0x143   : > { %v1023_v52 = vsel %vm1022_vm10, %v1019_v16, %v1021_v9  ;;  %v1024_v48 = vsel %vm1022_vm10, %v1021_v9, %v1019_v16  ;;  %1983 = vperm.xlu1 %2354, %v3042_v25  }
 0x144   : > { %v1036_v12 = vmul.f32 %v1029_v55, %v1023_v52  ;;  %v1037_v37 = vmul.f32 %v1033_v11, %v1024_v48  ;;  %v3191_v43 = vadd.f32 %v1012_v29, %v948_v31  ;;  %v3193_v24 = vadd.f32 %v1013_v42, %v949_v30 }
 0x145   : > { %v3204_v55 = vmul.f32 %v1451_v33, %v3017_v17  ;;  %v3207_v11 = vmul.f32 %v1455_v26, %v3015_v23 }
 0x146   : > { %v1045_v49 = vmul.f32 %v2879_v60, %v1036_v12  ;;  %v1046_v13 = vmul.f32 %v2879_v60, %v1037_v37  ;;  %v1207_v30 = vrot.slane %v3191_v43, %v2747_v34  ;;  %v1211_v60 = vrot.slane %v3193_v24, %v2747_v34 }
 0x147   : > { %2355 = vset.pattern.permute.xlu1 %v3805_v0  ;;  %v1228_v40 = vrot.slane %v3191_v43, %v2751_v36  ;;  %v1232_v54 = vrot.slane %v3193_v24, %v2751_v36 }
 0x148   : > { %v3198_v28 = vadd.f32 %v1045_v49, %v981_v22  ;;  %v3200_v21 = vadd.f32 %v1046_v13, %v982_v18  ;;  %1999 = vperm.xlu1 %2355, %v3042_v25   ;;  %v1244_v22 = vrot.slane %v3191_v43, %v2755_v38  ;;  %v1248_v18 = vrot.slane %v3193_v24, %v2755_v38 }
 0x149   : > { %v1213_v7 = vmul.f32 %v1211_v60, %v2897_v63 }
 0x14a   : > { %v1059_v0 = vrot.slane %v3198_v28, %v2747_v34  ;;  %v1063_v6 = vrot.slane %v3200_v21, %v2747_v34  ;;  %v1080_v25 = vrot.slane %v3198_v28, %v2751_v36  ;;  %v1084_v17 = vrot.slane %v3200_v21, %v2751_v36 }
 0x14b   : > { %v1096_v23 = vrot.slane %v3198_v28, %v2755_v38  ;;  %v1100_v56 = vrot.slane %v3200_v21, %v2755_v38  ;;  %v1112_v2 = vrot.slane %v3198_v28, %v2763_v44  ;;  %v1116_v51 = vrot.slane %v3200_v21, %v2763_v44 }
 0x14c   : > { %2357 = vset.pattern.permute.xlu1 %v3798_v14  ;;  %v1064_v41 = vmul.f32 %v1059_v0, %v2829_v46  ;;  %v1065_v4 = vmul.f32 %v1063_v6, %v2829_v46  ;;  %v1212_v14 = vmul.f32 %v1207_v30, %v2897_v63  ;;  %v1085_v16 = vmul.f32 %v1080_v25, %v2835_v47 }
 0x14d   : > { %2034 = vperm.xlu1 %2357, %v3072_v3   ;;  %v1086_v29 = vmul.f32 %v1084_v17, %v2835_v47  ;;  %v1101_v9 = vmul.f32 %v1096_v23, %v2907_v5  ;;  %v1102_v31 = vmul.f32 %v1100_v56, %v2907_v5  ;;  %v1128_v52 = vrot.slane %v3198_v28, %v2749_v35 }
 0x14e   : > { %v1071_v46 = vadd.f32 %v2887_v62, %v1064_v41  ;;  %v1072_v32 = vadd.f32 %v2887_v62, %v1065_v4  ;;  %v1132_v63 = vrot.slane %v3200_v21, %v2749_v35  ;;  %v1233_v47 = vmul.f32 %v1228_v40, %v2889_v20 }
 0x14f   : > { %v3243_v57 = vpop.permute.xlu0 %1723  ;;  %v1465_v42 = vpop.permute.xlu1 %1464  ;;  %v1234_v5 = vmul.f32 %v1232_v54, %v2889_v20  ;;  %v1117_v13 = vmul.f32 %v1112_v2, %v2847_v50  ;;  %v1118_v30 = vmul.f32 %v1116_v51, %v2847_v50  ;;  %v1219_v0 = vadd.f32 %v2882_v61, %v1212_v14 }
 0x150   : > { %v3256_v48 = vmul.f32 %v1465_v42, %v3204_v55  ;;  %v3259_v62 = vmul.f32 %v1465_v42, %v3207_v11  ;;  %v1087_v12 = vadd.f32 %v1085_v16, %v1071_v46  ;;  %v1088_v37 = vadd.f32 %v1086_v29, %v1072_v32  ;;  %v3807_v29 = vld [vmem:[#allocation10_spill] sm:$0xff] }
 0x151   : > { %2358 = vset.pattern.permute.xlu1 %v3806_v27  ;;  %v1220_v27 = vadd.f32 %v2882_v61, %v1213_v7  ;;  %v1249_v6 = vmul.f32 %v1244_v22, %v2919_v8  ;;  %v1250_v20 = vmul.f32 %v1248_v18, %v2919_v8  ;;  %v1133_v17 = vmul.f32 %v1128_v52, %v2855_v53  ;;  %v3808_v52 = vld [vmem:[#allocation12_spill] sm:$0xff] }
 0x152   : > { %2050 = vperm.xlu1 %2358, %v3072_v3   ;;  %v1103_v26 = vadd.f32 %v1101_v9, %v1087_v12  ;;  %v1104_v49 = vadd.f32 %v1102_v31, %v1088_v37  ;;  %v1134_v23 = vmul.f32 %v1132_v63, %v2855_v53  ;;  %v1235_v56 = vadd.f32 %v1233_v47, %v1219_v0  ;;  %v3810_v0 = vld [vmem:[#allocation14_spill] sm:$0xff] }
 0x153   : > { %v3265_v33 = vpop.permute.xlu0 %1484  ;;  %v3269_v60 = vpop.permute.xlu1 %1683  ;;  %v1236_v40 = vadd.f32 %v1234_v5, %v1220_v27  ;;  %v1260_v50 = vrot.slane %v3191_v43, %v2763_v44  ;;  %v1264_v54 = vrot.slane %v3193_v24, %v2763_v44  ;;  %v1160_v8 = vrot.slane %v3198_v28, %v2757_v39 }
 0x154   : > { %v1119_v25 = vadd.f32 %v1117_v13, %v1103_v26  ;;  %v1120_v3 = vadd.f32 %v1118_v30, %v1104_v49  ;;  %v1164_v22 = vrot.slane %v3200_v21, %v2757_v39  ;;  %v1251_v18 = vadd.f32 %v1249_v6, %v1235_v56  ;;  %v3809_v26 = vld [vmem:[#allocation13_spill] sm:$0xff] }
 0x155   : > { %v1252_v53 = vadd.f32 %v1250_v20, %v1236_v40  ;;  %v1176_v51 = vrot.slane %v3198_v28, %v2765_v45  ;;  %v1180_v14 = vrot.slane %v3200_v21, %v2765_v45  ;;  %v1265_v7 = vmul.f32 %v1260_v50, %v2895_v19 }
 0x156   : > { %v1135_v61 = vadd.f32 %v1133_v17, %v1119_v25  ;;  %v1136_v4 = vadd.f32 %v1134_v23, %v1120_v3  ;;  %v1266_v46 = vmul.f32 %v1264_v54, %v2895_v19  ;;  %v1276_v32 = vrot.slane %v3191_v43, %v2749_v35 }
 0x157   : > { %v3281_v41 = vpop.permute.xlu0 %1837  ;;  %v1280_v16 = vrot.slane %v3193_v24, %v2749_v35  ;;  %v1144_v42 = vrot.slane %v3198_v28, %v3807_v29  ;;  %v1148_v9 = vrot.slane %v3200_v21, %v3807_v29  ;;  %v1165_v63 = vmul.f32 %v1160_v8, %v3808_v52 }
 0x158   : > { %v3287_v2 = vpop.permute.xlu1 %1707  ;;  %v1166_v12 = vmul.f32 %v1164_v22, %v3808_v52  ;;  %v1267_v37 = vadd.f32 %v1265_v7, %v1251_v18  ;;  %v1268_v47 = vadd.f32 %v1266_v46, %v1252_v53  ;;  %v1181_v49 = vmul.f32 %v1176_v51, %v3809_v26 }
 0x159   : > { %v1182_v13 = vmul.f32 %v1180_v14, %v3809_v26  ;;  %v1281_v27 = vmul.f32 %v1276_v32, %v3810_v0  ;;  %v1282_v6 = vmul.f32 %v1280_v16, %v3810_v0  ;;  %v1308_v20 = vrot.slane %v3191_v43, %v2757_v39 }
 0x15a   : > { %v1312_v25 = vrot.slane %v3193_v24, %v2757_v39  ;;  %v1292_v23 = vrot.slane %v3191_v43, %v3807_v29  ;;  %v1296_v56 = vrot.slane %v3193_v24, %v3807_v29  ;;  %v1324_v8 = vrot.slane %v3191_v43, %v2765_v45 }
 0x15b   : > { %v1283_v50 = vadd.f32 %v1281_v27, %v1267_v37  ;;  %v1284_v54 = vadd.f32 %v1282_v6, %v1268_v47  ;;  %v1328_v22 = vrot.slane %v3193_v24, %v2765_v45 }
 0x15c   : > { %v1139_v31 = vpop.permute.xlu0 %1138 }
 0x15d   : > { %v1149_v19 = vmul.f32 %v1144_v42, %v1139_v31  ;;  %v1150_v5 = vmul.f32 %v1148_v9, %v1139_v31  ;;  %v3307_v30 = vpop.permute.xlu1 %1739  ;;  %v3812_v31 = vld [vmem:[#allocation17_spill] sm:$0xff] }
 0x15e   : > { %v1329_v52 = vmul.f32 %v1324_v8, %v3812_v31  ;;  %v1330_v37 = vmul.f32 %v1328_v22, %v3812_v31 }
 0x15f   : > { %v1151_v3 = vadd.f32 %v1149_v19, %v1135_v61  ;;  %v1152_v17 = vadd.f32 %v1150_v5, %v1136_v4  ;;  %v3811_v4 = vld [vmem:[#allocation15_spill] sm:$0xff] }
 0x160   : > { %v1287_v40 = vpop.permute.xlu0 %1286  ;;  %v1313_v14 = vmul.f32 %v1308_v20, %v3811_v4  ;;  %v1314_v7 = vmul.f32 %v1312_v25, %v3811_v4  ;;  %v3813_v4 = vld [vmem:[#allocation19_spill] sm:$0xff] }
 0x161   : > { %v1167_v18 = vadd.f32 %v1165_v63, %v1151_v3  ;;  %v1168_v53 = vadd.f32 %v1166_v12, %v1152_v17  ;;  %v1297_v51 = vmul.f32 %v1292_v23, %v1287_v40  ;;  %v1298_v61 = vmul.f32 %v1296_v56, %v1287_v40 }
 0x162   : > { %v3325_v9 = vpop.permute.xlu1 %1755 }
 0x163   : > { %v1183_v46 = vadd.f32 %v1181_v49, %v1167_v18  ;;  %v1184_v32 = vadd.f32 %v1182_v13, %v1168_v53  ;;  %v1299_v16 = vadd.f32 %v1297_v51, %v1283_v50  ;;  %v1300_v42 = vadd.f32 %v1298_v61, %v1284_v54 }
 0x164   : > { %v3329_v47 = vpop.permute.xlu0 %1771 }
 0x165   : > { %v2229_v63 = vmul.f32 -1.442695, %v1183_v46  ;;  %v2230_v12 = vmul.f32 -1.442695, %v1184_v32  ;;  %v1315_v19 = vadd.f32 %v1313_v14, %v1299_v16  ;;  %v1316_v5 = vadd.f32 %v1314_v7, %v1300_v42  ;;  %v3814_v7 = vld [vmem:[#allocation20_spill] sm:$0xff]  ;;  %v3815_v16 = vld [vmem:[#allocation18_spill] sm:$0xff] }
 0x167   : > { %2361 = vpow2.f32 %v2229_v63  ;;  %v1331_v26 = vadd.f32 %v1329_v52, %v1315_v19  ;;  %v1332_v0 = vadd.f32 %v1330_v37, %v1316_v5  ;;  %v3331_v49 = vpop.permute.xlu1 %1787  ;;  %v3816_v37 = vld [vmem:[#allocation25_spill] sm:$0xff] }
 0x168   : > { %2363 = vpow2.f32 %v2230_v12  ;;  %v3333_v13 = vpop.permute.xlu0 %1534  ;;  %v3817_v12 = vld [vmem:[#allocation26_spill] sm:$0xff] }
 0x169   : > { %v2231_v27 = vmul.f32 -1.442695, %v1331_v26  ;;  %v2232_v6 = vmul.f32 -1.442695, %v1332_v0 }
 0x16b   : > { %2365 = vpow2.f32 %v2231_v27 }
 0x16c   : > { %2367 = vpow2.f32 %v2232_v6  ;;  %v3335_v20 = vpop.permute.xlu0 %1565  ;;  %v3337_v25 = vpop.permute.xlu1 %1803  ;;  %v3819_v6 = vld [vmem:[#allocation21_spill] sm:$0xff] }
 0x170   : > { %v3339_v3 = vpop.permute.xlu0 %1609 }
 0x171   : > { %v3341_v17 = vpop.permute.xlu1 %1821 }
 0x174   : > { %v2362_v23 = vpop.eup %2361  ;;  %v3343_v56 = vpop.permute.xlu0 %1901 }
 0x175   : > { %v2364_v40 = vpop.eup %2363  ;;  %v1191_v50 = vadd.f32 1.0, %v2362_v23  ;;  %v1483_v8 = vpop.permute.xlu1 %1482 }
 0x176   : > { %v1192_v54 = vadd.f32 1.0, %v2364_v40  ;;  %v3820_v40 = vld [vmem:[#allocation22_spill] sm:$0xff] }
 0x177   : > { %2369 = vrcp.f32 %v1191_v50 }
 0x178   : > { %v2366_v22 = vpop.eup %2365  ;;  %2371 = vrcp.f32 %v1192_v54  ;;  %v3821_v54 = vld [vmem:[#allocation23_spill] sm:$0xff] }
 0x179   : > { %v2368_v18 = vpop.eup %2367  ;;  %v1339_v53 = vadd.f32 1.0, %v2366_v22  ;;  %v1382_v51 = vpop.permute.xlu0 %1381 }
 0x17a   : > { %v1340_v61 = vadd.f32 1.0, %v2368_v18  ;;  %v1384_v14 = vmul.f32 %v1382_v51, %v3813_v4  ;;  %v1385_v46 = vmul.f32 %v1382_v51, %v3814_v7  ;;  %v1517_v32 = vpop.permute.xlu1 %1516  ;;  %v3822_v18 = vld [vmem:[#allocation24_spill] sm:$0xff] }
 0x17b   : > { %2373 = vrcp.f32 %v1339_v53 }
 0x17c   : > { %2375 = vrcp.f32 %v1340_v61  ;;  %v1391_v42 = vadd.f32 %v3815_v16, %v1384_v14  ;;  %v1392_v31 = vadd.f32 %v3815_v16, %v1385_v46  ;;  %v3824_v46 = vld [vmem:[#allocation16_spill] sm:$0xff] }
 0x17d   : > { %v1405_v52 = vpop.permute.xlu0 %1404  ;;  %v3370_v16 = vmul.f32 %v3083_v58, %v3824_v46 }
 0x17e   : > { %v1426_v63 = vadd.f32 %v3816_v37, %v1391_v42  ;;  %v1427_v19 = vadd.f32 %v3817_v12, %v1392_v31  ;;  %v3351_v5 = vpop.permute.xlu1 %1546  ;;  %v1407_v23 = vadd.f32 %v1405_v52, %v3819_v6  ;;  %v1408_v50 = vadd.f32 %v1405_v52, %v3820_v40 }
 0x17f   : > { %3818 = vst [vmem:[#allocation10_spill] sm:$0xff] %v3351_v5  ;;  %v3379_v52 = vmul.f32 %v3113_v1, %v3083_v58  ;;  %v1487_v58 = vsel %vm890_vm6, %v3265_v33, %v1483_v8 }
 0x180   : > { %v3354_v26 = vadd.f32 %v3256_v48, %v1426_v63  ;;  %v3357_v0 = vadd.f32 %v3259_v62, %v1427_v19 }
 0x181   : > { %v1433_v27 = vpop.permute.xlu0 %1432  ;;  %3825 = vst [vmem:[#allocation13_spill] sm:$0xff] %v3379_v52 }
 0x182   : > { %v1435_v22 = vmul.f32 %v1433_v27, %v3821_v54  ;;  %v1436_v53 = vmul.f32 %v1433_v27, %v3822_v18  ;;  %v3363_v51 = vpop.permute.xlu1 %1853 }
 0x183   : > { %3823 = vst [vmem:[#allocation12_spill] sm:$0xff] %v3363_v51 }
 0x184   : > { %v2370_v61 = vpop.eup %2369  ;;  %v1437_v4 = vadd.f32 %v1435_v22, %v1407_v23  ;;  %v1438_v14 = vadd.f32 %v1436_v53, %v1408_v50  ;;  %v3406_v50 = vld [vmem:[%s2688_s25] sm:$0xff]  ;;  %v3829_v53 = vld [vmem:[#allocation27_spill] sm:$0xff]  ;;  %s621_s25 = sand.u32 1, %s2430_s22  }
 0x185   : > { %v2372_v7 = vpop.eup %2371  ;;  %v3366_v48 = vmul.f32 %v2370_v61, %v3191_v43  ;;  %v1476_v62 = vpop.permute.xlu0 %1475  ;;  %3827 = vst [vmem:[#allocation15_spill] sm:$0xff] %v3406_v50  ;;  %v1488_v61 = vmul.f32 %v1487_v58, %v3829_v53  ;;  %s2211_s6 = sshll.u32 %s621_s25, 3  ;;  %s2103_s11 = scalar_lea.sflag [#allocation3], %s621_s25 }
 0x186   : > { %v3373_v42 = vmul.f32 %v2372_v7, %v3193_v24  ;;  %v3375_v31 = vpop.permute.xlu1 %1536  ;;  %v1486_v24 = vsel %vm890_vm6, %v1483_v8, %v3265_v33  ;;  %v1479_v6 = vmul.f32 %v1476_v62, %v3207_v11  ;;  %v1686_v33 = vadd.f32 %v3406_v50, %v3269_v60  ;;  %v3828_v8 = vld [vmem:[#allocation8_spill] sm:$0xff]  ;;  %s623_s30 = scalar_lea.vmem [#allocation2], %s2211_s6 }
 0x187   : > { %v1687_v54 = vadd.f32 %v3269_v60, %v3828_v8  ;;  %v1761_v11 = vrot.slane %v3366_v48, %v2749_v35  ;;  %v1777_v18 = vrot.slane %v3366_v48, %v3807_v29  ;;  %v3830_v7 = vld [vmem:[#allocation28_spill] sm:$0xff]  ;;  %v3430_v40 = vmul.f32 %v1517_v32, %v3828_v8  ;;  %s2121_s27 = sshll.u32 %s623_s30, 4  ;;  %s2122_s27 = int_to_ptr.vmem [resolvable:$true] %s2121_s27 }
 0x188   : > { %v2374_v37 = vpop.eup %2373  ;;  %v1749_v22 = vrot.slane %v3373_v42, %v2763_v44  ;;  %v1765_v60 = vrot.slane %v3373_v42, %v2749_v35  ;;  %v1797_v58 = vrot.slane %v3373_v42, %v2757_v39  ;;  %v1481_v53 = vadd.f32 %v1479_v6, %v1438_v14  ;;  %s2378_s21 = scalar_lea.vmem %s2122_s27, 128  ;;  %p2385_p0 = scmp.lt.s32.totalorder %s2122_s27, %s2383_s5 }
 0x189   : > { %v2376_v63 = vpop.eup %2375  ;;  %v3382_v43 = vmul.f32 %v2374_v37, %v3198_v28  ;;  %v1692_v12 = vpop.permute.xlu0 %1691  ;;  %v1478_v28 = vmul.f32 %v1476_v62, %v3204_v55  ;;  %v1745_v55 = vrot.slane %v3366_v48, %v2763_v44  ;;  %v1489_v62 = vmul.f32 %v1486_v24, %v3830_v7  ;;  %p2379_p11 = scmp.ne.s32.totalorder %s2122_s27, %s2378_s21  ;;  %p2386_p1 = scmp.lt.s32.totalorder %s2384_s7, %s2378_s21 }
 0x18a   : > { %v3387_v27 = vmul.f32 %v2376_v63, %v3200_v21  ;;  %v3399_v23 = vpop.permute.xlu1 %1869  ;;  %v1793_v37 = vrot.slane %v3366_v48, %v2757_v39  ;;  %v3427_v63 = vmul.f32 %v3406_v50, %v1517_v32  ;;  %v1781_v21 = vrot.slane %v3373_v42, %v3807_v29 }
 0x18b   : > { %3826 = vst [vmem:[#allocation14_spill] sm:$0xff] %v3399_v23  ;;  %v1480_v24 = vadd.f32 %v1478_v28, %v1437_v4  ;;  %v1750_v7 = vmul.f32 %v1745_v55, %v3307_v30  ;;  %v1766_v1 = vmul.f32 %v1761_v11, %v3325_v9  ;;  %v1697_v19 = vrot.slane %v3366_v48, %v2747_v34  ;;  %p2380_p12 = pnand %p2379_p11, %p2604_p5  ;;  %p2387_p2 = por %p2386_p1, %p2385_p0 }
 0x18c   : > { %v1701_v50 = vrot.slane %v3373_v42, %v2747_v34  ;;  %v1751_v8 = vmul.f32 %v1749_v22, %v3307_v30  ;;  %v1782_v52 = vmul.f32 %v1777_v18, %v3329_v47  ;;  %v1713_v39 = vrot.slane %v3366_v48, %v2751_v36 }
 0x18d   : > { %v1495_v46 = vpop.permute.xlu0 %1494  ;;  %v1717_v4 = vrot.slane %v3373_v42, %v2751_v36  ;;  %v1702_v28 = vmul.f32 %v1697_v19, %v1692_v12  ;;  %v1729_v55 = vrot.slane %v3366_v48, %v2755_v38  ;;  %v1733_v11 = vrot.slane %v3373_v42, %v2755_v38  ;;  %p2381_p13 = pneg %p2380_p12 }
 0x18e   : > { %v1703_v6 = vmul.f32 %v1701_v50, %v1692_v12  ;;  %v1767_v30 = vmul.f32 %v1765_v60, %v3325_v9  ;;  %v1783_v22 = vmul.f32 %v1781_v21, %v3329_v47  ;;  %v1798_v18 = vmul.f32 %v1793_v37, %v3331_v49 }
 0x18f   : > { %v1506_v32 = vpop.permute.xlu1 %1505  ;;  %v1799_v35 = vmul.f32 %v1797_v58, %v3331_v49  ;;  %v1704_v23 = vadd.f32 %v1702_v28, %v1686_v33  ;;  %v1718_v12 = vmul.f32 %v1713_v39, %v3287_v2  ;;  %v1719_v19 = vmul.f32 %v1717_v4, %v3287_v2  ;;  %p2388_p3 = pnand %p2387_p2, %p2381_p13 }
 0x190   : > { %v1705_v51 = vadd.f32 %v1703_v6, %v1687_v54  ;;  %v1735_v5 = vmul.f32 %v1733_v11, %v3243_v57  ;;  %v1847_v9 = vrot.slane %v3387_v27, %v2751_v36  ;;  %v1843_v47 = vrot.slane %v3382_v43, %v2751_v36 }
 0x191   : > { %v3448_v14 = vpop.permute.xlu0 %1589  ;;  %v1720_v21 = vadd.f32 %v1718_v12, %v1704_v23  ;;  %v1497_v49 = vmul.f32 %v1495_v46, %v1488_v61  ;;  %v1498_v33 = vmul.f32 %v1495_v46, %v1489_v62  ;;  %v1813_v39 = vrot.slane %v3373_v42, %v2765_v45 }
 0x192   : > { %3831 = vst [vmem:[#allocation17_spill] sm:$0xff] %v3448_v14  ;;  %v1734_v14 = vmul.f32 %v1729_v55, %v3243_v57  ;;  %v1721_v60 = vadd.f32 %v1719_v19, %v1705_v51  ;;  %v1809_v2 = vrot.slane %v3366_v48, %v2765_v45  ;;  %v3472_v54 = vmul.f32 %v1847_v9, %v3281_v41 }
 0x193   : > { %v1568_v50 = vpop.permute.xlu1 %1567  ;;  %v3475_v57 = vmul.f32 %v1843_v47, %v3281_v41  ;;  %v1499_v51 = vadd.f32 %v1497_v49, %v3354_v26  ;;  %v1500_v23 = vadd.f32 %v1498_v33, %v3357_v0  ;;  %v1831_v42 = vrot.slane %v3387_v27, %v2747_v34 }
 0x194   : > { %v1736_v58 = vadd.f32 %v1734_v14, %v1720_v21  ;;  %v1737_v4 = vadd.f32 %v1735_v5, %v1721_v60  ;;  %v1827_v48 = vrot.slane %v3382_v43, %v2747_v34  ;;  %v1508_v28 = vmul.f32 %v1506_v32, %v1488_v61 }
 0x195   : > { %v3477_v37 = vpop.permute.xlu0 %1619  ;;  %v1509_v6 = vmul.f32 %v1506_v32, %v1489_v62  ;;  %v1907_v41 = vrot.slane %v3382_v43, %v3807_v29  ;;  %v1911_v5 = vrot.slane %v3387_v27, %v3807_v29  ;;  %v1814_v0 = vmul.f32 %v1809_v2, %v3337_v25 }
 0x196   : > { %v1752_v14 = vadd.f32 %v1750_v7, %v1736_v58  ;;  %v1753_v26 = vadd.f32 %v1751_v8, %v1737_v4  ;;  %v1815_v55 = vmul.f32 %v1813_v39, %v3337_v25  ;;  %v3493_v11 = vadd.f32 %v1508_v28, %v1480_v24  ;;  %v3834_v58 = vld [vmem:[#allocation10_spill] sm:$0xff] }
 0x197   : > { %v3481_v46 = vpop.permute.xlu1 %1885  ;;  %v3495_v12 = vadd.f32 %v1509_v6, %v1481_v53  ;;  %v1538_v61 = vsel %vm956_vm8, %v3333_v13, %v3375_v31  ;;  %v1539_v29 = vsel %vm956_vm8, %v3375_v31, %v3333_v13  ;;  %v1863_v25 = vrot.slane %v3387_v27, %v2755_v38  ;;  %v3836_v6 = vld [vmem:[#allocation30_spill] sm:$0xff] }
 0x198   : > { %v1768_v62 = vadd.f32 %v1766_v1, %v1752_v14  ;;  %v1769_v8 = vadd.f32 %v1767_v30, %v1753_v26  ;;  %v1859_v24 = vrot.slane %v3382_v43, %v2755_v38  ;;  %v1570_v53 = vsel %vm1569_vm11, %v3335_v20, %v1568_v50 }
 0x199   : > { %v1571_v32 = vsel %vm1569_vm11, %v1568_v50, %v3335_v20  ;;  %v3515_v19 = vpop.permute.xlu0 %1527  ;;  %v1832_v13 = vmul.f32 %v1827_v48, %v3341_v17  ;;  %v1833_v31 = vmul.f32 %v1831_v42, %v3341_v17  ;;  %v3521_v9 = vmul.f32 %v1907_v41, %v3343_v56  ;;  %v3835_v48 = vld [vmem:[#allocation29_spill] sm:$0xff] }
 0x19a   : > { %v1784_v1 = vadd.f32 %v1782_v52, %v1768_v62  ;;  %v1785_v30 = vadd.f32 %v1783_v22, %v1769_v8  ;;  %v3524_v47 = vmul.f32 %v1911_v5, %v3343_v56  ;;  %v3527_v21 = vmul.f32 %v1538_v61, %v3127_v15  ;;  %v3837_v26 = vld [vmem:[#allocation17_spill] sm:$0xff]  ;;  %v3839_v61 = vld [vmem:[#allocation14_spill] sm:$0xff] }
 0x19b   : > { %v1608_v7 = vpop.permute.xlu1 %1607  ;;  %v3530_v20 = vmul.f32 %v1539_v29, %v3131_v59  ;;  %v3832_v17 = vrot.slane %v3370_v16, %v2747_v34  ;;  %v3833_v22 = vrot.slane %v3370_v16, %v2751_v36  ;;  %v1879_v15 = vrot.slane %v3387_v27, %v2763_v44 }
 0x19c   : > { %v1801_v50 = vadd.f32 %v1799_v35, %v1785_v30  ;;  %v1800_v60 = vadd.f32 %v1798_v18, %v1784_v1  ;;  %v1875_v59 = vrot.slane %v3382_v43, %v2763_v44  ;;  %v1611_v35 = vsel %vm923_vm7, %v1608_v7, %v3339_v3 }
 0x19d   : > { %v3535_v52 = vmul.f32 %v3832_v17, %v1570_v53  ;;  %v3540_v49 = vmul.f32 %v3833_v22, %v1571_v32  ;;  %v1612_v18 = vsel %vm923_vm7, %v3339_v3, %v1608_v7  ;;  %v1521_v16 = vadd.f32 %v3427_v63, %v1499_v51  ;;  %v1641_v5 = vpop.permute.xlu0 %1640 }
 0x19e   : > { %v1817_v33 = vadd.f32 %v1815_v55, %v1801_v50  ;;  %v1816_v39 = vadd.f32 %v1814_v0, %v1800_v60  ;;  %v1522_v2 = vadd.f32 %v3430_v40, %v1500_v23  ;;  %v1549_v4 = vmul.f32 %v3834_v58, %v3527_v21  ;;  %v3838_v23 = vld [vmem:[#allocation12_spill] sm:$0xff] }
 0x19f   : > { %v1663_v56 = vpop.permute.xlu1 %1662  ;;  %v1550_v42 = vmul.f32 %v3834_v58, %v3530_v20  ;;  %v3559_v28 = vmul.f32 %v1611_v35, %v3835_v48  ;;  %v3562_v41 = vmul.f32 %v1612_v18, %v3836_v6  ;;  %v1592_v63 = vmul.f32 %v3837_v26, %v3535_v52 }
 0x1a0   : > { %v1835_v3 = vadd.f32 %v1833_v31, %v1817_v33  ;;  %v1834_v14 = vadd.f32 %v1832_v13, %v1816_v39  ;;  %v1593_v40 = vmul.f32 %v3837_v26, %v3540_v49  ;;  %v1864_v0 = vmul.f32 %v1859_v24, %v3838_v23  ;;  %v3840_v13 = vld [vmem:[#allocation9_spill] sm:$0xff] }
 0x1a1   : > { %v1865_v55 = vmul.f32 %v1863_v25, %v3838_v23  ;;  %v1880_v29 = vmul.f32 %v1875_v59, %v3839_v61  ;;  %v1881_v62 = vmul.f32 %v1879_v15, %v3839_v61  ;;  %v1551_v53 = vadd.f32 %v1549_v4, %v1521_v16  ;;  %v1601_v15 = vpop.permute.xlu0 %1600  ;;  %v3841_v39 = vld [vmem:[#allocation13_spill] sm:$0xff] }
 0x1a2   : > { %v1851_v8 = vadd.f32 %v3472_v54, %v1835_v3  ;;  %v1850_v7 = vadd.f32 %v3475_v57, %v1834_v14  ;;  %v1552_v32 = vadd.f32 %v1550_v42, %v1522_v2  ;;  %v1895_v31 = vrot.slane %v3387_v27, %v3840_v13 }
 0x1a3   : > { %v1558_v51 = vpop.permute.xlu1 %1557  ;;  %v1891_v1 = vrot.slane %v3382_v43, %v3840_v13  ;;  %v1622_v24 = vmul.f32 %v3477_v37, %v3559_v28  ;;  %v1623_v25 = vmul.f32 %v3477_v37, %v3562_v41  ;;  %v1594_v60 = vadd.f32 %v1592_v63, %v1551_v53  ;;  %v3846_v13 = vld [vmem:[#allocation8_spill] sm:$0xff] }
 0x1a4   : > { %v1867_v30 = vadd.f32 %v1865_v55, %v1851_v8  ;;  %v1866_v50 = vadd.f32 %v1864_v0, %v1850_v7  ;;  %v1595_v54 = vadd.f32 %v1593_v40, %v1552_v32  ;;  %v1897_v22 = vmul.f32 %v1895_v31, %v3481_v46 }
 0x1a5   : > { %v1896_v57 = vmul.f32 %v1891_v1, %v3481_v46  ;;  %v3842_v37 = vrot.slane %v3841_v39, %v2747_v34  ;;  %v3843_v2 = vrot.slane %v3841_v39, %v2751_v36  ;;  %v1624_v4 = vadd.f32 %v1622_v24, %v1594_v60  ;;  %v3844_v46 = vld [vmem:[#allocation11_spill] sm:$0xff] }
 0x1a6   : > { %v1882_v18 = vadd.f32 %v1880_v29, %v1866_v50  ;;  %v1883_v33 = vadd.f32 %v1881_v62, %v1867_v30  ;;  %v1625_v42 = vadd.f32 %v1623_v25, %v1595_v54  ;;  %v1927_v48 = vrot.slane %v3387_v27, %v3844_v46  ;;  %v1952_v29 = vpop.permute.xlu0 %1951 }
 0x1a7   : > { %v1639_v17 = vpop.permute.xlu1 %1638  ;;  %v1923_v6 = vrot.slane %v3382_v43, %v3844_v46  ;;  %v1943_v7 = vrot.slane %v3387_v27, %v2765_v45  ;;  %v1939_v53 = vrot.slane %v3382_v43, %v2765_v45  ;;  %v1531_v31 = vmul.f32 %v3515_v19, %v3846_v13 }
 0x1a8   : > { %v1643_v59 = vsel %vm1642_vm12, %v1639_v17, %v1641_v5  ;;  %v1644_v35 = vsel %vm1642_vm12, %v1641_v5, %v1639_v17  ;;  %v1898_v10 = vadd.f32 %v1896_v57, %v1882_v18  ;;  %v1899_v5 = vadd.f32 %v1897_v22, %v1883_v33 }
 0x1a9   : > { %v1656_v16 = vmul.f32 %v3842_v37, %v1643_v59  ;;  %v1657_v58 = vmul.f32 %v3843_v2, %v1644_v35  ;;  %v1560_v50 = vmul.f32 %v1558_v51, %v3527_v21  ;;  %v1561_v45 = vmul.f32 %v1558_v51, %v3530_v20 }
 0x1aa   : > { %v1915_v55 = vadd.f32 %v3524_v47, %v1899_v5  ;;  %v1914_v61 = vadd.f32 %v3521_v9, %v1898_v10  ;;  %v1968_v43 = vpop.permute.xlu0 %1967  ;;  %v1533_v22 = vadd.f32 %v1531_v31, %v3495_v12  ;;  %v1603_v20 = vmul.f32 %v1601_v15, %v3535_v52 }
 0x1ab   : > { %v1665_v3 = vmul.f32 %v1663_v56, %v1656_v16  ;;  %v1666_v14 = vmul.f32 %v1663_v56, %v1657_v58  ;;  %v1918_v26 = vpop.permute.xlu1 %1917  ;;  %v3845_v56 = vld [vmem:[#allocation15_spill] sm:$0xff]  ;;  %v1604_v51 = vmul.f32 %v1601_v15, %v3540_v49 }
 0x1ac   : > { %v1928_v63 = vmul.f32 %v1923_v6, %v1918_v26  ;;  %v1929_v40 = vmul.f32 %v1927_v48, %v1918_v26  ;;  %v1530_v32 = vmul.f32 %v3845_v56, %v3515_v19  ;;  %v1563_v2 = vadd.f32 %v1561_v45, %v1533_v22 }
 0x1ad   : > { %v1667_v23 = vadd.f32 %v1665_v3, %v1624_v4  ;;  %v1668_v0 = vadd.f32 %v1666_v14, %v1625_v42 }
 0x1ae   : > { %v1930_v62 = vadd.f32 %v1928_v63, %v1914_v61  ;;  %v1931_v8 = vadd.f32 %v1929_v40, %v1915_v55  ;;  %v1532_v57 = vadd.f32 %v1530_v32, %v3493_v11  ;;  %v1606_v12 = vadd.f32 %v1604_v51, %v1563_v2 }
 0x1af   : > { %v1957_v1 = vrot.slane %v1667_v23, %v2747_v34  ;;  %v1961_v47 = vrot.slane %v1668_v0, %v2747_v34  ;;  %v1973_v24 = vrot.slane %v1667_v23, %v2751_v36  ;;  %v1977_v25 = vrot.slane %v1668_v0, %v2751_v36 }
 0x1b0   : > { %v1934_v9 = vpop.permute.xlu1 %1933  ;;  %v1562_v37 = vadd.f32 %v1560_v50, %v1532_v57  ;;  %v1989_v14 = vrot.slane %v1667_v23, %v2755_v38  ;;  %v1993_v26 = vrot.slane %v1668_v0, %v2755_v38 }
 0x1b1   : > { %v1944_v30 = vmul.f32 %v1939_v53, %v1934_v9  ;;  %v1945_v27 = vmul.f32 %v1943_v7, %v1934_v9  ;;  %v1962_v60 = vmul.f32 %v1957_v1, %v1952_v29  ;;  %v1963_v54 = vmul.f32 %v1961_v47, %v1952_v29  ;;  %v2019_v7 = vpop.permute.xlu0 %2018 }
 0x1b2   : > { %v1978_v59 = vmul.f32 %v1973_v24, %v1968_v43  ;;  %v1979_v35 = vmul.f32 %v1977_v25, %v1968_v43  ;;  %v1605_v48 = vadd.f32 %v1603_v20, %v1562_v37 }
 0x1b3   : > { %v1946_v17 = vadd.f32 %v1944_v30, %v1930_v62  ;;  %v1947_v19 = vadd.f32 %v1945_v27, %v1931_v8 }
 0x1b5   : > { %v1964_v18 = vadd.f32 %v1962_v60, %v1946_v17  ;;  %v1965_v33 = vadd.f32 %v1963_v54, %v1947_v19  ;;  %v1631_v39 = vpop.permute.xlu1 %1630  ;;  %v2067_v43 = vpop.permute.xlu0 %2066 }
 0x1b6   : > { %v1633_v42 = vmul.f32 %v1631_v39, %v3559_v28  ;;  %v1634_v46 = vmul.f32 %v1631_v39, %v3562_v41 }
 0x1b7   : > { %v1981_v4 = vadd.f32 %v1979_v35, %v1965_v33  ;;  %v1980_v21 = vadd.f32 %v1978_v59, %v1964_v18 }
 0x1b8   : > { %v1635_v5 = vadd.f32 %v1633_v42, %v1605_v48  ;;  %v1636_v3 = vadd.f32 %v1634_v46, %v1606_v12 }
 0x1b9   : > { %v1674_v11 = vpop.permute.xlu1 %1673 }
 0x1ba   : > { %v1676_v6 = vmul.f32 %v1674_v11, %v1656_v16  ;;  %v1677_v10 = vmul.f32 %v1674_v11, %v1657_v58  ;;  %v2005_v16 = vrot.slane %v1667_v23, %v2763_v44  ;;  %v2009_v58 = vrot.slane %v1668_v0, %v2763_v44 }
 0x1bc   : > { %v1678_v63 = vadd.f32 %v1676_v6, %v1635_v5  ;;  %v1679_v40 = vadd.f32 %v1677_v10, %v1636_v3 }
 0x1be   : > { %v1984_v52 = vpop.permute.xlu1 %1983  ;;  %v2024_v41 = vrot.slane %v1678_v63, %v2747_v34  ;;  %v2028_v61 = vrot.slane %v1679_v40, %v2747_v34  ;;  %v2040_v31 = vrot.slane %v1678_v63, %v2751_v36  ;;  %v2044_v1 = vrot.slane %v1679_v40, %v2751_v36 }
 0x1bf   : > { %v1994_v55 = vmul.f32 %v1989_v14, %v1984_v52  ;;  %v1995_v49 = vmul.f32 %v1993_v26, %v1984_v52  ;;  %v2072_v30 = vrot.slane %v1678_v63, %v2763_v44  ;;  %v2076_v27 = vrot.slane %v1679_v40, %v2763_v44 }
 0x1c0   : > { %v2029_v53 = vmul.f32 %v2024_v41, %v2019_v7  ;;  %v2030_v56 = vmul.f32 %v2028_v61, %v2019_v7  ;;  %v2056_v50 = vrot.slane %v1678_v63, %v2755_v38  ;;  %v2060_v45 = vrot.slane %v1679_v40, %v2755_v38 }
 0x1c1   : > { %v1996_v15 = vadd.f32 %v1994_v55, %v1980_v21  ;;  %v1997_v28 = vadd.f32 %v1995_v49, %v1981_v4  ;;  %v2077_v17 = vmul.f32 %v2072_v30, %v2067_v43  ;;  %v2078_v19 = vmul.f32 %v2076_v27, %v2067_v43 }
 0x1c3   : > { %v2000_v29 = vpop.permute.xlu1 %1999 }
 0x1c4   : > { %v2010_v62 = vmul.f32 %v2005_v16, %v2000_v29  ;;  %v2011_v8 = vmul.f32 %v2009_v58, %v2000_v29 }
 0x1c6   : > { %v2012_v32 = vadd.f32 %v2010_v62, %v1996_v15  ;;  %v2013_v13 = vadd.f32 %v2011_v8, %v1997_v28 }
 0x1c8   : > { %v2032_v47 = vadd.f32 %v2030_v56, %v2013_v13  ;;  %v2035_v9 = vpop.permute.xlu1 %2034  ;;  %v2031_v34 = vadd.f32 %v2029_v53, %v2012_v32 }
 0x1c9   : > { %v2045_v24 = vmul.f32 %v2040_v31, %v2035_v9  ;;  %v2046_v23 = vmul.f32 %v2044_v1, %v2035_v9 }
 0x1cb   : > { %v2047_v25 = vadd.f32 %v2045_v24, %v2031_v34  ;;  %v2048_v0 = vadd.f32 %v2046_v23, %v2032_v47 }
 0x1cd   : > { %v2051_v60 = vpop.permute.xlu1 %2050 }
 0x1ce   : > { %v2061_v54 = vmul.f32 %v2056_v50, %v2051_v60  ;;  %v2062_v36 = vmul.f32 %v2060_v45, %v2051_v60 }
 0x1d0   : > { %v2063_v57 = vadd.f32 %v2061_v54, %v2047_v25  ;;  %v2064_v22 = vadd.f32 %v2062_v36, %v2048_v0 }
 0x1d2   : > { %v2079_v59 = vadd.f32 %v2077_v17, %v2063_v57  ;;  %v2080_v35 = vadd.f32 %v2078_v19, %v2064_v22 }
 0x1d4   : > { %v2086_v18 = vsel %vm1351_vm0, %v2079_v59, 0.0  ;;  %v2087_v44 = vsel %vm1351_vm0, %v2080_v35, 0.0  ;;  %v2091_v33 = vmul.f32 %v2079_v59, %v2079_v59  ;;  %v2092_v39 = vmul.f32 %v2080_v35, %v2080_v35 }
 0x1d5   : > { %v2088_v38 = vadd.f32 %v2087_v44, %v2086_v18  ;;  %v2083_v37 = vcombine.low %v2079_v59, %v2080_v35 }
 0x1d6   : > { %v2093_v2 = vsel %vm1351_vm0, %v2091_v33, 0.0  ;;  %v2094_v4 = vsel %vm1351_vm0, %v2092_v39, 0.0 }
 0x1d7   : > { %2089 = vadd.xlane.f32.xlu1 %v2088_v38  ;;  %v2095_v21 = vadd.f32 %v2094_v4, %v2093_v2  ;;  %2085 = vst [vmem:[%s623_s30] sm:$0xff] %v2083_v37 }
 0x1d9   : > { %2096 = vadd.xlane.f32.xlu0 %v2095_v21 }
 0x1da   : > { %2391 = shalt.err (!%p2388_p3)
}
 0x1db   : > { %s2392_s2 = scalar_lea.hbm %s2119_s23, 128  ;;  %s2396_s30 = scalar_lea.hbm %s3693_s19, 256 }
 0x1dc   : > { %p2393_p4 = scmp.ne.s32.totalorder %s2119_s23, %s2392_s2  ;;  %p2397_p9 = scmp.lt.s32.totalorder %s2119_s23, %s3693_s19 }
 0x1dd   : > { %p2398_p10 = scmp.lt.s32.totalorder %s2396_s30, %s2392_s2 }
 0x1de   : > { %p2394_p7 = pnand %p2393_p4, %p2604_p5 }
 0x1df   : > { %p2399_p11 = por %p2398_p10, %p2397_p9 }
 0x1e0   : > { %p2395_p8 = pneg %p2394_p7 }
 0x1e2   : > { %p2400_p12 = pnand %p2399_p11, %p2395_p8 }
 0x1e4   : > { %2403 = shalt.err (!%p2400_p12)
}
 0x1e5   : > { %2259 = dma.vmem_to_hbm [thread:$0]  (%p2604_p5), %s2122_s27, 128, %s2119_s23, %s2103_s11   ;;  %vm2098_vm13 = vcmask 7168   ;;  %vm2100_vm14 = vcmask 11264  }
 0x1e6   : > { %s2214_s7 = sshll.u32 %s2676_s28, 2 }
 0x1e7   : > { %s638_s21 = scalar_lea.vmem %s3694_s20, %s2214_s7 }
 0x260   : > { %v2090_v20 = vpop.xlane.xlu1 %2089 }
 0x262   : > { %v2097_v51 = vpop.xlane.xlu0 %2096 }
 0x263   : > { %v2099_v42 = vsel %vm2098_vm13, %v2090_v20, %v2097_v51 }
 0x264   : > { %2101 = vst.msk [vmem:[%s638_s21] sm:$0xf] %vm2100_vm14, %v2099_v42 }
 0x265 PF: > { %p2265_p13 = scmp.ge.s32.totalorder %s2438_s24, 2  ;;  %s2136_s0 = sand.u32 1, %s2426_s1  }
 0x266   : > { %s2137_s4 = scalar_lea.sflag [#allocation3], %s2136_s0 }
 0x267   : > { %p2262_p0 = pnand %p2265_p13, %p2608_p6 }
 0x269   : > { %p2263_p5 = pneg %p2262_p0 }
 0x26b   : > { %2421 = dma.done.wait (%p2263_p5), %s2137_s4, 128  }
 0x26c   : > { %2423 = vsyncadd (%p2263_p5), %s2137_s4, 4294967168  ;;  %s3847_s24 = sld [smem:[#allocation6_spill]]  ;;  %s3850_s1 = smov %s2430_s22 }
 0x26d   : > { %s3848_s28 = sld [smem:[#allocation5_spill]] }
 0x26e   : > { %s3849_s23 = sld [smem:[#allocation7_spill]] }
 0x272   : > { %p31_p1 = scmp.ge.s32.totalorder %s3847_s24, 4  }
 0x273   : > { %s3851_s22 = smov %s3848_s28 }
 0x274   :  { %33 = sbr.rel (!%p31_p1) target bundleno = 14 (0xe), region = 176 }
 0x279   :  { %2149 = vsyncpa [#allocation3], 1 }
 0x27a   :  { %2151 = vsyncpa [#allocation3 + $0x1], 1 }

</bundles_post_ra>
